<compile_context>
chip_gen: v7x
topology: tpu7x:2x2x1
jax: 0.10.0
libtpu: 0.0.40
codegen_flags: <defaults>
</compile_context>

<pallas_src>
import jax
import jax.numpy as jnp
import numpy as np
from jax import lax
from jax.experimental import pallas as pl
from jax.experimental.pallas import tpu as pltpu

EPS = 1e-5          # LayerNorm epsilon
LEAKY_SLOPE = 0.01  # torch nn.LeakyReLU default
# TODO(synk): verify leaky_relu slope against the project's act_fun() (SincNet often uses 0.2).


# --------------------------------------------------------------------------
# Fused kernel factory.  layer_meta: tuple of
#   (Cin, Cout, K, pool, Lout, Lp, use_laynorm, activation)
# --------------------------------------------------------------------------
def _make_fused_cnn_kernel(layer_meta, use_laynorm_inp, batch):
    def kernel(*refs):
        # ---- parse the flat ref list ---------------------------------------
        idx = 0
        x_ref = refs[idx]; idx += 1
        if use_laynorm_inp:
            g0_ref, b0_ref = refs[idx], refs[idx + 1]; idx += 2
        layer_refs = []
        for (Cin, Cout, K, pool, Lout, Lp, use_ln, act) in layer_meta:
            if pool > 1:
                layer_refs.append(tuple(refs[idx:idx + 5])); idx += 5
            else:
                layer_refs.append(tuple(refs[idx:idx + 4]) + (None,)); idx += 4
        o_ref = refs[idx]

        outs = []
        # ---- fully unrolled loop over the (small, static) batch -------------
        for b in range(batch):
            h = x_ref[b].astype(jnp.float32)                  # (1, F)

            # input LayerNorm over the feature axis (C == 1 per module)
            if use_laynorm_inp:
                m = jnp.mean(h)
                v = jnp.mean((h - m) ** 2)
                h = (h - m) * lax.rsqrt(v + EPS)
                h = (h * g0_ref[...].astype(jnp.float32)
                     + b0_ref[...].astype(jnp.float32))

            # CNN layers (tiny static sizes -> fully unrolled Python loops)
            for meta, lrefs in zip(layer_meta, layer_refs):
                (Cin, Cout, K, pool, Lout, Lp, use_ln, act) = meta
                w_ref, bias_ref, g_ref, t_ref, sel_ref = lrefs
                w = w_ref[...].astype(jnp.float32)            # (Cout, Cin*K)

                # conv1d (valid) as VPU broadcast-FMA over contiguous slices.
                acc = jnp.zeros((Cout, Lout), jnp.float32)
                for ci in range(Cin):
                    hrow = h[ci:ci + 1, :]                    # (1, Lin)
                    for k in range(K):
                        col = ci * K + k
                        acc = acc + w[:, col:col + 1] * hrow[:, k:k + Lout]
                acc = acc + bias_ref[...].astype(jnp.float32)  # (Cout,1) bcast

                # max_pool1d(pool): phase max via contiguous shifted slices
                # (VPU), then one narrow host-built 0/1 compaction dot.
                if pool == 1:
                    pooled = acc[:, :Lp]
                else:
                    Lvalid = (Lp - 1) * pool + 1
                    m_ph = acc[:, 0:Lvalid]
                    for p in range(1, pool):
                        m_ph = jnp.maximum(m_ph, acc[:, p:p + Lvalid])
                    # sel is (Lvalid, Lp) with exactly one 1.0 per column, so
                    # this dot is an exact gather in f32 under HIGHEST.
                    pooled = jnp.dot(m_ph, sel_ref[...].astype(jnp.float32),
                                     preferred_element_type=jnp.float32,
                                     precision=lax.Precision.HIGHEST)

                if use_ln:
                    # SincNet LayerNorm([Cout, Lp]): normalize over all
                    # non-batch dims of this sample.
                    mu = jnp.mean(pooled)
                    var = jnp.mean((pooled - mu) ** 2)
                    pooled = (pooled - mu) * lax.rsqrt(var + EPS)
                    pooled = (pooled * g_ref[...].astype(jnp.float32)
                              + t_ref[...].astype(jnp.float32))
                # TODO(synk): use_batchnorm path (running stats) not implemented.

                if act == "relu":
                    pooled = jnp.maximum(pooled, 0.0)
                elif act == "tanh":
                    pooled = jnp.tanh(pooled)
                elif act == "leaky_relu":
                    pooled = jnp.where(pooled > 0, pooled, LEAKY_SLOPE * pooled)
                # dropout: identity (inference / p = 0.0)

                h = pooled                                    # (Cout, Lp)

            outs.append(h)

        # single (B, Cl, Ll) store
        o_ref[...] = jnp.stack(outs, axis=0).astype(o_ref.dtype)

    return kernel


# --------------------------------------------------------------------------
# Wrapper: one fused pallas_call, single grid step (batch folded).
# --------------------------------------------------------------------------
def cnn_forward(x, params, cfg):
    """x: (B, 1, F) float32.  Returns (B, out_dim) like the PyTorch module."""
    B, C, F = x.shape
    assert C == 1  # module asserts x.shape[1] == 1
    if any(cfg["use_batchnorm"]) or cfg.get("use_batchnorm_inp", False):
        # TODO(synk): batchnorm (running-stats) path not implemented.
        raise NotImplementedError("use_batchnorm is not supported by this kernel")

    args = [x]
    in_specs = [pl.BlockSpec((B, 1, F), lambda i: (0, 0, 0))]
    if cfg["use_laynorm_inp"]:
        args += [params["ln0_gamma"].reshape(1, F),
                 params["ln0_beta"].reshape(1, F)]
        in_specs += [pl.BlockSpec((1, F), lambda i: (0, 0)),
                     pl.BlockSpec((1, F), lambda i: (0, 0))]

    layer_meta = []
    cur = F
    flops = 0
    for (w, b, g, bt), pool, ul, act in zip(
            params["layers"], cfg["max_pool_len"], cfg["use_laynorm"],
            cfg["activation"]):
        Cout, Cin, K = w.shape
        Lout = cur - K + 1
        Lp = Lout // pool
        layer_meta.append((Cin, Cout, K, pool, Lout, Lp, bool(ul), act))
        # Pre-flatten conv weight to one lane-contiguous (Cout, Cin*K) slab.
        args += [w.reshape(Cout, Cin * K), b.reshape(Cout, 1), g, bt]
        in_specs += [
            pl.BlockSpec((Cout, Cin * K), lambda i: (0, 0)),
            pl.BlockSpec((Cout, 1), lambda i: (0, 0)),
            pl.BlockSpec((Cout, Lp), lambda i: (0, 0)),
            pl.BlockSpec((Cout, Lp), lambda i: (0, 0)),
        ]
        flops += 2 * B * Cout * Cin * K * Lout
        if pool > 1:
            # Host-built 0/1 compaction selector: picks every pool-th lane.
            Lvalid = (Lp - 1) * pool + 1
            sel = np.zeros((Lvalid, Lp), np.float32)
            sel[np.arange(Lp) * pool, np.arange(Lp)] = 1.0
            args.append(jnp.asarray(sel))
            in_specs.append(pl.BlockSpec((Lvalid, Lp), lambda i: (0, 0)))
            flops += 2 * B * Cout * Lvalid * Lp
        cur = Lp

    Cl, Ll = layer_meta[-1][1], layer_meta[-1][5]
    bytes_accessed = (sum(int(np.prod(a.shape)) * a.dtype.itemsize for a in args)
                      + B * Cl * Ll * x.dtype.itemsize)
    cost = pl.CostEstimate(flops=int(flops),
                           transcendentals=int(B * (1 + len(layer_meta))),
                           bytes_accessed=int(bytes_accessed))

    kernel = _make_fused_cnn_kernel(tuple(layer_meta),
                                    bool(cfg["use_laynorm_inp"]), B)
    out = pl.pallas_call(
        kernel,
        out_shape=jax.ShapeDtypeStruct((B, Cl, Ll), x.dtype),
        grid=(1,),
        in_specs=in_specs,
        out_specs=pl.BlockSpec((B, Cl, Ll), lambda i: (0, 0, 0)),
        compiler_params=pltpu.CompilerParams(
            dimension_semantics=("arbitrary",)),
        cost_estimate=cost,
    )(*args)
    # x.view(batch, -1): free XLA-side reshape (row-major, matches torch).
    return out.reshape(B, -1)


# --------------------------------------------------------------------------
# Pure-JAX reference for correctness checking.
# --------------------------------------------------------------------------
def cnn_forward_ref(x, params, cfg):
    if cfg["use_laynorm_inp"]:
        mean = x.mean(axis=-1, keepdims=True)
        var = ((x - mean) ** 2).mean(axis=-1, keepdims=True)
        x = (x - mean) / jnp.sqrt(var + EPS)
        x = x * params["ln0_gamma"][None] + params["ln0_beta"][None]
    for (w, b, g, bt), pool, ul, act in zip(
            params["layers"], cfg["max_pool_len"], cfg["use_laynorm"],
            cfg["activation"]):
        B, Cin, Lin = x.shape
        Cout, _, K = w.shape
        Lout = Lin - K + 1
        out = jnp.zeros((B, Cout, Lout), jnp.float32)
        for k in range(K):
            out = out + jnp.einsum('oi,bil->bol', w[:, :, k], x[:, :, k:k + Lout])
        out = out + b.reshape(1, Cout, 1)
        Lp = Lout // pool
        out = out[:, :, :Lp * pool].reshape(B, Cout, Lp, pool).max(axis=-1)
        if ul:
            mean = out.mean(axis=(1, 2), keepdims=True)
            var = ((out - mean) ** 2).mean(axis=(1, 2), keepdims=True)
            out = (out - mean) / jnp.sqrt(var + EPS) * g[None] + bt[None]
        if act == "relu":
            out = jnp.maximum(out, 0.0)
        elif act == "tanh":
            out = jnp.tanh(out)
        elif act == "leaky_relu":
            out = jnp.where(out > 0, out, LEAKY_SLOPE * out)
        x = out
    return x.reshape(x.shape[0], -1)


if __name__ == "__main__":
    # Config consistent with the PyTorch CNN module (small shapes).
    batch = 2
    num_input_feats = 64
    cfg = dict(
        num_input_feats=num_input_feats,
        input_context=1,
        N_filters=[8, 8],
        kernel_sizes=[5, 3],
        max_pool_len=[2, 2],
        use_laynorm=[True, True],
        use_batchnorm=[False, False],
        use_laynorm_inp=True,
        use_batchnorm_inp=False,
        activation=["relu", "relu"],
        dropout=[0.0, 0.0],
    )

    key = jax.random.PRNGKey(0)
    keys = jax.random.split(key, 32)
    x = jax.random.normal(keys[0], (batch, 1, num_input_feats), jnp.float32)

    # Deterministic parameter init (shapes per CNNLayer.__init__).
    params = {
        "ln0_gamma": 1.0 + 0.05 * jax.random.normal(
            keys[1], (1, num_input_feats), jnp.float32),
        "ln0_beta": 0.05 * jax.random.normal(
            keys[2], (1, num_input_feats), jnp.float32),
        "layers": [],
    }
    current = num_input_feats
    prev = 1
    ki = 3
    for Nf, K, pool in zip(cfg["N_filters"], cfg["kernel_sizes"], cfg["max_pool_len"]):
        bound = 1.0 / float(prev * K) ** 0.5
        w = jax.random.uniform(keys[ki], (Nf, prev, K), jnp.float32, -bound, bound); ki += 1
        b = jax.random.uniform(keys[ki], (Nf, 1), jnp.float32, -bound, bound); ki += 1
        Lp = (current - K + 1) // pool
        g = 1.0 + 0.05 * jax.random.normal(keys[ki], (Nf, Lp), jnp.float32); ki += 1
        bt = 0.05 * jax.random.normal(keys[ki], (Nf, Lp), jnp.float32); ki += 1
        params["layers"].append((w, b, g, bt))
        current = Lp
        prev = Nf
    out_dim = current * cfg["N_filters"][-1]

    out = cnn_forward(x, params, cfg)
    out = jax.block_until_ready(out)
    assert out.shape == (batch, out_dim), out.shape

    ref = jax.block_until_ready(cnn_forward_ref(x, params, cfg))
    assert jnp.allclose(out, ref, rtol=1e-4, atol=1e-4), \
        float(jnp.max(jnp.abs(out - ref)))

    print("KERNEL_OK")
</pallas_src>

<mosaic_0001>
module attributes {stable_mosaic.version = 11 : i64} {
  func.func @kernel(%arg0: i32, %arg1: memref<2x1x64xf32, #tpu.memory_space<vmem>>, %arg2: memref<1x64xf32, #tpu.memory_space<vmem>>, %arg3: memref<1x64xf32, #tpu.memory_space<vmem>>, %arg4: memref<8x5xf32, #tpu.memory_space<vmem>>, %arg5: memref<8x1xf32, #tpu.memory_space<vmem>>, %arg6: memref<8x30xf32, #tpu.memory_space<vmem>>, %arg7: memref<8x30xf32, #tpu.memory_space<vmem>>, %arg8: memref<59x30xf32, #tpu.memory_space<vmem>>, %arg9: memref<8x24xf32, #tpu.memory_space<vmem>>, %arg10: memref<8x1xf32, #tpu.memory_space<vmem>>, %arg11: memref<8x14xf32, #tpu.memory_space<vmem>>, %arg12: memref<8x14xf32, #tpu.memory_space<vmem>>, %arg13: memref<27x14xf32, #tpu.memory_space<vmem>>, %arg14: memref<2x8x14xf32, #tpu.memory_space<vmem>>) attributes {dimension_semantics = [#tpu.dimension_semantics<arbitrary>], iteration_bounds = array<i64: 1>, scalar_prefetch = 0 : i64, scratch_operands = 0 : i64, tpu.core_type = #tpu.core_type<tc>, window_params = [{pipeline_mode = #tpu.pipeline_mode<synchronous>, transform_indices = @transform_0, window_bounds = array<i64: 2, 1, 64>}, {pipeline_mode = #tpu.pipeline_mode<synchronous>, transform_indices = @transform_1, window_bounds = array<i64: 1, 64>}, {pipeline_mode = #tpu.pipeline_mode<synchronous>, transform_indices = @transform_2, window_bounds = array<i64: 1, 64>}, {pipeline_mode = #tpu.pipeline_mode<synchronous>, transform_indices = @transform_3, window_bounds = array<i64: 8, 5>}, {pipeline_mode = #tpu.pipeline_mode<synchronous>, transform_indices = @transform_4, window_bounds = array<i64: 8, 1>}, {pipeline_mode = #tpu.pipeline_mode<synchronous>, transform_indices = @transform_5, window_bounds = array<i64: 8, 30>}, {pipeline_mode = #tpu.pipeline_mode<synchronous>, transform_indices = @transform_6, window_bounds = array<i64: 8, 30>}, {pipeline_mode = #tpu.pipeline_mode<synchronous>, transform_indices = @transform_7, window_bounds = array<i64: 59, 30>}, {pipeline_mode = #tpu.pipeline_mode<synchronous>, transform_indices = @transform_8, window_bounds = array<i64: 8, 24>}, {pipeline_mode = #tpu.pipeline_mode<synchronous>, transform_indices = @transform_9, window_bounds = array<i64: 8, 1>}, {pipeline_mode = #tpu.pipeline_mode<synchronous>, transform_indices = @transform_10, window_bounds = array<i64: 8, 14>}, {pipeline_mode = #tpu.pipeline_mode<synchronous>, transform_indices = @transform_11, window_bounds = array<i64: 8, 14>}, {pipeline_mode = #tpu.pipeline_mode<synchronous>, transform_indices = @transform_12, window_bounds = array<i64: 27, 14>}, {pipeline_mode = #tpu.pipeline_mode<synchronous>, transform_indices = @transform_13, window_bounds = array<i64: 2, 8, 14>}]} {
    %c0 = arith.constant 0 : index
    %c0_0 = arith.constant 0 : index
    %c0_1 = arith.constant 0 : index
    %0 = vector.load %arg1[%c0, %c0_0, %c0_1] : memref<2x1x64xf32, #tpu.memory_space<vmem>>, vector<1x1x64xf32>
    %1 = vector.shape_cast %0 : vector<1x1x64xf32> to vector<1x64xf32>
    %2 = vector.shape_cast %1 : vector<1x64xf32> to vector<1x1x64xf32>
    %cst = arith.constant dense<0.000000e+00> : vector<1xf32>
    %3 = vector.multi_reduction <add>, %2, %cst [1, 2] : vector<1x1x64xf32> to vector<1xf32>
    %4 = vector.shape_cast %3 : vector<1xf32> to vector<1x1x1xf32>
    %5 = vector.extract %4[0, 0, 0] : f32 from vector<1x1x1xf32>
    %cst_2 = arith.constant 6.400000e+01 : f32
    %6 = arith.divf %5, %cst_2 : f32
    %7 = vector.broadcast %6 : f32 to vector<1x64xf32>
    %8 = arith.subf %1, %7 : vector<1x64xf32>
    %9 = arith.mulf %8, %8 : vector<1x64xf32>
    %10 = vector.shape_cast %9 : vector<1x64xf32> to vector<1x1x64xf32>
    %cst_3 = arith.constant dense<0.000000e+00> : vector<1xf32>
    %11 = vector.multi_reduction <add>, %10, %cst_3 [1, 2] : vector<1x1x64xf32> to vector<1xf32>
    %12 = vector.shape_cast %11 : vector<1xf32> to vector<1x1x1xf32>
    %13 = vector.extract %12[0, 0, 0] : f32 from vector<1x1x1xf32>
    %cst_4 = arith.constant 6.400000e+01 : f32
    %14 = arith.divf %13, %cst_4 : f32
    %15 = vector.broadcast %6 : f32 to vector<1x64xf32>
    %16 = arith.subf %1, %15 : vector<1x64xf32>
    %cst_5 = arith.constant 9.99999974E-6 : f32
    %17 = arith.addf %14, %cst_5 : f32
    %18 = math.rsqrt %17 : f32
    %19 = vector.broadcast %18 : f32 to vector<1x64xf32>
    %20 = arith.mulf %16, %19 : vector<1x64xf32>
    %c0_6 = arith.constant 0 : index
    %c0_7 = arith.constant 0 : index
    %21 = vector.load %arg2[%c0_6, %c0_7] : memref<1x64xf32, #tpu.memory_space<vmem>>, vector<1x64xf32>
    %22 = arith.mulf %20, %21 : vector<1x64xf32>
    %c0_8 = arith.constant 0 : index
    %c0_9 = arith.constant 0 : index
    %23 = vector.load %arg3[%c0_8, %c0_9] : memref<1x64xf32, #tpu.memory_space<vmem>>, vector<1x64xf32>
    %24 = arith.addf %22, %23 : vector<1x64xf32>
    %c0_10 = arith.constant 0 : index
    %c0_11 = arith.constant 0 : index
    %25 = vector.load %arg4[%c0_10, %c0_11] : memref<8x5xf32, #tpu.memory_space<vmem>>, vector<8x5xf32>
    %cst_12 = arith.constant 0.000000e+00 : f32
    %26 = vector.broadcast %cst_12 : f32 to vector<8x60xf32>
    %27 = vector.extract_strided_slice %25 {offsets = [0, 0], sizes = [8, 1], strides = [1, 1]} : vector<8x5xf32> to vector<8x1xf32>
    %28 = vector.extract_strided_slice %24 {offsets = [0, 0], sizes = [1, 60], strides = [1, 1]} : vector<1x64xf32> to vector<1x60xf32>
    %29 = vector.broadcast %27 : vector<8x1xf32> to vector<8x60xf32>
    %30 = vector.broadcast %28 : vector<1x60xf32> to vector<8x60xf32>
    %31 = arith.mulf %29, %30 : vector<8x60xf32>
    %32 = arith.addf %26, %31 : vector<8x60xf32>
    %33 = vector.extract_strided_slice %25 {offsets = [0, 1], sizes = [8, 1], strides = [1, 1]} : vector<8x5xf32> to vector<8x1xf32>
    %34 = vector.extract_strided_slice %24 {offsets = [0, 1], sizes = [1, 60], strides = [1, 1]} : vector<1x64xf32> to vector<1x60xf32>
    %35 = vector.broadcast %33 : vector<8x1xf32> to vector<8x60xf32>
    %36 = vector.broadcast %34 : vector<1x60xf32> to vector<8x60xf32>
    %37 = arith.mulf %35, %36 : vector<8x60xf32>
    %38 = arith.addf %32, %37 : vector<8x60xf32>
    %39 = vector.extract_strided_slice %25 {offsets = [0, 2], sizes = [8, 1], strides = [1, 1]} : vector<8x5xf32> to vector<8x1xf32>
    %40 = vector.extract_strided_slice %24 {offsets = [0, 2], sizes = [1, 60], strides = [1, 1]} : vector<1x64xf32> to vector<1x60xf32>
    %41 = vector.broadcast %39 : vector<8x1xf32> to vector<8x60xf32>
    %42 = vector.broadcast %40 : vector<1x60xf32> to vector<8x60xf32>
    %43 = arith.mulf %41, %42 : vector<8x60xf32>
    %44 = arith.addf %38, %43 : vector<8x60xf32>
    %45 = vector.extract_strided_slice %25 {offsets = [0, 3], sizes = [8, 1], strides = [1, 1]} : vector<8x5xf32> to vector<8x1xf32>
    %46 = vector.extract_strided_slice %24 {offsets = [0, 3], sizes = [1, 60], strides = [1, 1]} : vector<1x64xf32> to vector<1x60xf32>
    %47 = vector.broadcast %45 : vector<8x1xf32> to vector<8x60xf32>
    %48 = vector.broadcast %46 : vector<1x60xf32> to vector<8x60xf32>
    %49 = arith.mulf %47, %48 : vector<8x60xf32>
    %50 = arith.addf %44, %49 : vector<8x60xf32>
    %51 = vector.extract_strided_slice %25 {offsets = [0, 4], sizes = [8, 1], strides = [1, 1]} : vector<8x5xf32> to vector<8x1xf32>
    %52 = vector.extract_strided_slice %24 {offsets = [0, 4], sizes = [1, 60], strides = [1, 1]} : vector<1x64xf32> to vector<1x60xf32>
    %53 = vector.broadcast %51 : vector<8x1xf32> to vector<8x60xf32>
    %54 = vector.broadcast %52 : vector<1x60xf32> to vector<8x60xf32>
    %55 = arith.mulf %53, %54 : vector<8x60xf32>
    %56 = arith.addf %50, %55 : vector<8x60xf32>
    %c0_13 = arith.constant 0 : index
    %c0_14 = arith.constant 0 : index
    %57 = vector.load %arg5[%c0_13, %c0_14] : memref<8x1xf32, #tpu.memory_space<vmem>>, vector<8x1xf32>
    %58 = vector.broadcast %57 : vector<8x1xf32> to vector<8x60xf32>
    %59 = arith.addf %56, %58 : vector<8x60xf32>
    %60 = vector.extract_strided_slice %59 {offsets = [0, 0], sizes = [8, 59], strides = [1, 1]} : vector<8x60xf32> to vector<8x59xf32>
    %61 = vector.extract_strided_slice %59 {offsets = [0, 1], sizes = [8, 59], strides = [1, 1]} : vector<8x60xf32> to vector<8x59xf32>
    %62 = arith.maximumf %60, %61 : vector<8x59xf32>
    %c0_15 = arith.constant 0 : index
    %c0_16 = arith.constant 0 : index
    %63 = vector.load %arg8[%c0_15, %c0_16] : memref<59x30xf32, #tpu.memory_space<vmem>>, vector<59x30xf32>
    %cst_17 = arith.constant dense<0.000000e+00> : vector<8x30xf32>
    %64 = tpu.matmul %62, %63, %cst_17 {dimension_numbers = #tpu.dot_dimension_numbers<[1], [0], [0], [1], [0, 0, 1, 1], [], []>, precision = #tpu.contract_precision<fp32>} : vector<8x59xf32>, vector<59x30xf32>, vector<8x30xf32> -> vector<8x30xf32>
    %65 = vector.shape_cast %64 : vector<8x30xf32> to vector<1x8x30xf32>
    %cst_18 = arith.constant dense<0.000000e+00> : vector<1xf32>
    %66 = vector.multi_reduction <add>, %65, %cst_18 [1, 2] : vector<1x8x30xf32> to vector<1xf32>
    %67 = vector.shape_cast %66 : vector<1xf32> to vector<1x1x1xf32>
    %68 = vector.extract %67[0, 0, 0] : f32 from vector<1x1x1xf32>
    %cst_19 = arith.constant 2.400000e+02 : f32
    %69 = arith.divf %68, %cst_19 : f32
    %70 = vector.broadcast %69 : f32 to vector<8x30xf32>
    %71 = arith.subf %64, %70 : vector<8x30xf32>
    %72 = arith.mulf %71, %71 : vector<8x30xf32>
    %73 = vector.shape_cast %72 : vector<8x30xf32> to vector<1x8x30xf32>
    %cst_20 = arith.constant dense<0.000000e+00> : vector<1xf32>
    %74 = vector.multi_reduction <add>, %73, %cst_20 [1, 2] : vector<1x8x30xf32> to vector<1xf32>
    %75 = vector.shape_cast %74 : vector<1xf32> to vector<1x1x1xf32>
    %76 = vector.extract %75[0, 0, 0] : f32 from vector<1x1x1xf32>
    %cst_21 = arith.constant 2.400000e+02 : f32
    %77 = arith.divf %76, %cst_21 : f32
    %78 = vector.broadcast %69 : f32 to vector<8x30xf32>
    %79 = arith.subf %64, %78 : vector<8x30xf32>
    %cst_22 = arith.constant 9.99999974E-6 : f32
    %80 = arith.addf %77, %cst_22 : f32
    %81 = math.rsqrt %80 : f32
    %82 = vector.broadcast %81 : f32 to vector<8x30xf32>
    %83 = arith.mulf %79, %82 : vector<8x30xf32>
    %c0_23 = arith.constant 0 : index
    %c0_24 = arith.constant 0 : index
    %84 = vector.load %arg6[%c0_23, %c0_24] : memref<8x30xf32, #tpu.memory_space<vmem>>, vector<8x30xf32>
    %85 = arith.mulf %83, %84 : vector<8x30xf32>
    %c0_25 = arith.constant 0 : index
    %c0_26 = arith.constant 0 : index
    %86 = vector.load %arg7[%c0_25, %c0_26] : memref<8x30xf32, #tpu.memory_space<vmem>>, vector<8x30xf32>
    %87 = arith.addf %85, %86 : vector<8x30xf32>
    %cst_27 = arith.constant 0.000000e+00 : f32
    %88 = vector.broadcast %cst_27 : f32 to vector<8x30xf32>
    %89 = arith.maximumf %87, %88 : vector<8x30xf32>
    %c0_28 = arith.constant 0 : index
    %c0_29 = arith.constant 0 : index
    %90 = vector.load %arg9[%c0_28, %c0_29] : memref<8x24xf32, #tpu.memory_space<vmem>>, vector<8x24xf32>
    %cst_30 = arith.constant 0.000000e+00 : f32
    %91 = vector.broadcast %cst_30 : f32 to vector<8x28xf32>
    %92 = vector.extract_strided_slice %89 {offsets = [0, 0], sizes = [1, 30], strides = [1, 1]} : vector<8x30xf32> to vector<1x30xf32>
    %93 = vector.extract_strided_slice %90 {offsets = [0, 0], sizes = [8, 1], strides = [1, 1]} : vector<8x24xf32> to vector<8x1xf32>
    %94 = vector.extract_strided_slice %92 {offsets = [0, 0], sizes = [1, 28], strides = [1, 1]} : vector<1x30xf32> to vector<1x28xf32>
    %95 = vector.broadcast %93 : vector<8x1xf32> to vector<8x28xf32>
    %96 = vector.broadcast %94 : vector<1x28xf32> to vector<8x28xf32>
    %97 = arith.mulf %95, %96 : vector<8x28xf32>
    %98 = arith.addf %91, %97 : vector<8x28xf32>
    %99 = vector.extract_strided_slice %90 {offsets = [0, 1], sizes = [8, 1], strides = [1, 1]} : vector<8x24xf32> to vector<8x1xf32>
    %100 = vector.extract_strided_slice %92 {offsets = [0, 1], sizes = [1, 28], strides = [1, 1]} : vector<1x30xf32> to vector<1x28xf32>
    %101 = vector.broadcast %99 : vector<8x1xf32> to vector<8x28xf32>
    %102 = vector.broadcast %100 : vector<1x28xf32> to vector<8x28xf32>
    %103 = arith.mulf %101, %102 : vector<8x28xf32>
    %104 = arith.addf %98, %103 : vector<8x28xf32>
    %105 = vector.extract_strided_slice %90 {offsets = [0, 2], sizes = [8, 1], strides = [1, 1]} : vector<8x24xf32> to vector<8x1xf32>
    %106 = vector.extract_strided_slice %92 {offsets = [0, 2], sizes = [1, 28], strides = [1, 1]} : vector<1x30xf32> to vector<1x28xf32>
    %107 = vector.broadcast %105 : vector<8x1xf32> to vector<8x28xf32>
    %108 = vector.broadcast %106 : vector<1x28xf32> to vector<8x28xf32>
    %109 = arith.mulf %107, %108 : vector<8x28xf32>
    %110 = arith.addf %104, %109 : vector<8x28xf32>
    %111 = vector.extract_strided_slice %89 {offsets = [1, 0], sizes = [1, 30], strides = [1, 1]} : vector<8x30xf32> to vector<1x30xf32>
    %112 = vector.extract_strided_slice %90 {offsets = [0, 3], sizes = [8, 1], strides = [1, 1]} : vector<8x24xf32> to vector<8x1xf32>
    %113 = vector.extract_strided_slice %111 {offsets = [0, 0], sizes = [1, 28], strides = [1, 1]} : vector<1x30xf32> to vector<1x28xf32>
    %114 = vector.broadcast %112 : vector<8x1xf32> to vector<8x28xf32>
    %115 = vector.broadcast %113 : vector<1x28xf32> to vector<8x28xf32>
    %116 = arith.mulf %114, %115 : vector<8x28xf32>
    %117 = arith.addf %110, %116 : vector<8x28xf32>
    %118 = vector.extract_strided_slice %90 {offsets = [0, 4], sizes = [8, 1], strides = [1, 1]} : vector<8x24xf32> to vector<8x1xf32>
    %119 = vector.extract_strided_slice %111 {offsets = [0, 1], sizes = [1, 28], strides = [1, 1]} : vector<1x30xf32> to vector<1x28xf32>
    %120 = vector.broadcast %118 : vector<8x1xf32> to vector<8x28xf32>
    %121 = vector.broadcast %119 : vector<1x28xf32> to vector<8x28xf32>
    %122 = arith.mulf %120, %121 : vector<8x28xf32>
    %123 = arith.addf %117, %122 : vector<8x28xf32>
    %124 = vector.extract_strided_slice %90 {offsets = [0, 5], sizes = [8, 1], strides = [1, 1]} : vector<8x24xf32> to vector<8x1xf32>
    %125 = vector.extract_strided_slice %111 {offsets = [0, 2], sizes = [1, 28], strides = [1, 1]} : vector<1x30xf32> to vector<1x28xf32>
    %126 = vector.broadcast %124 : vector<8x1xf32> to vector<8x28xf32>
    %127 = vector.broadcast %125 : vector<1x28xf32> to vector<8x28xf32>
    %128 = arith.mulf %126, %127 : vector<8x28xf32>
    %129 = arith.addf %123, %128 : vector<8x28xf32>
    %130 = vector.extract_strided_slice %89 {offsets = [2, 0], sizes = [1, 30], strides = [1, 1]} : vector<8x30xf32> to vector<1x30xf32>
    %131 = vector.extract_strided_slice %90 {offsets = [0, 6], sizes = [8, 1], strides = [1, 1]} : vector<8x24xf32> to vector<8x1xf32>
    %132 = vector.extract_strided_slice %130 {offsets = [0, 0], sizes = [1, 28], strides = [1, 1]} : vector<1x30xf32> to vector<1x28xf32>
    %133 = vector.broadcast %131 : vector<8x1xf32> to vector<8x28xf32>
    %134 = vector.broadcast %132 : vector<1x28xf32> to vector<8x28xf32>
    %135 = arith.mulf %133, %134 : vector<8x28xf32>
    %136 = arith.addf %129, %135 : vector<8x28xf32>
    %137 = vector.extract_strided_slice %90 {offsets = [0, 7], sizes = [8, 1], strides = [1, 1]} : vector<8x24xf32> to vector<8x1xf32>
    %138 = vector.extract_strided_slice %130 {offsets = [0, 1], sizes = [1, 28], strides = [1, 1]} : vector<1x30xf32> to vector<1x28xf32>
    %139 = vector.broadcast %137 : vector<8x1xf32> to vector<8x28xf32>
    %140 = vector.broadcast %138 : vector<1x28xf32> to vector<8x28xf32>
    %141 = arith.mulf %139, %140 : vector<8x28xf32>
    %142 = arith.addf %136, %141 : vector<8x28xf32>
    %143 = vector.extract_strided_slice %90 {offsets = [0, 8], sizes = [8, 1], strides = [1, 1]} : vector<8x24xf32> to vector<8x1xf32>
    %144 = vector.extract_strided_slice %130 {offsets = [0, 2], sizes = [1, 28], strides = [1, 1]} : vector<1x30xf32> to vector<1x28xf32>
    %145 = vector.broadcast %143 : vector<8x1xf32> to vector<8x28xf32>
    %146 = vector.broadcast %144 : vector<1x28xf32> to vector<8x28xf32>
    %147 = arith.mulf %145, %146 : vector<8x28xf32>
    %148 = arith.addf %142, %147 : vector<8x28xf32>
    %149 = vector.extract_strided_slice %89 {offsets = [3, 0], sizes = [1, 30], strides = [1, 1]} : vector<8x30xf32> to vector<1x30xf32>
    %150 = vector.extract_strided_slice %90 {offsets = [0, 9], sizes = [8, 1], strides = [1, 1]} : vector<8x24xf32> to vector<8x1xf32>
    %151 = vector.extract_strided_slice %149 {offsets = [0, 0], sizes = [1, 28], strides = [1, 1]} : vector<1x30xf32> to vector<1x28xf32>
    %152 = vector.broadcast %150 : vector<8x1xf32> to vector<8x28xf32>
    %153 = vector.broadcast %151 : vector<1x28xf32> to vector<8x28xf32>
    %154 = arith.mulf %152, %153 : vector<8x28xf32>
    %155 = arith.addf %148, %154 : vector<8x28xf32>
    %156 = vector.extract_strided_slice %90 {offsets = [0, 10], sizes = [8, 1], strides = [1, 1]} : vector<8x24xf32> to vector<8x1xf32>
    %157 = vector.extract_strided_slice %149 {offsets = [0, 1], sizes = [1, 28], strides = [1, 1]} : vector<1x30xf32> to vector<1x28xf32>
    %158 = vector.broadcast %156 : vector<8x1xf32> to vector<8x28xf32>
    %159 = vector.broadcast %157 : vector<1x28xf32> to vector<8x28xf32>
    %160 = arith.mulf %158, %159 : vector<8x28xf32>
    %161 = arith.addf %155, %160 : vector<8x28xf32>
    %162 = vector.extract_strided_slice %90 {offsets = [0, 11], sizes = [8, 1], strides = [1, 1]} : vector<8x24xf32> to vector<8x1xf32>
    %163 = vector.extract_strided_slice %149 {offsets = [0, 2], sizes = [1, 28], strides = [1, 1]} : vector<1x30xf32> to vector<1x28xf32>
    %164 = vector.broadcast %162 : vector<8x1xf32> to vector<8x28xf32>
    %165 = vector.broadcast %163 : vector<1x28xf32> to vector<8x28xf32>
    %166 = arith.mulf %164, %165 : vector<8x28xf32>
    %167 = arith.addf %161, %166 : vector<8x28xf32>
    %168 = vector.extract_strided_slice %89 {offsets = [4, 0], sizes = [1, 30], strides = [1, 1]} : vector<8x30xf32> to vector<1x30xf32>
    %169 = vector.extract_strided_slice %90 {offsets = [0, 12], sizes = [8, 1], strides = [1, 1]} : vector<8x24xf32> to vector<8x1xf32>
    %170 = vector.extract_strided_slice %168 {offsets = [0, 0], sizes = [1, 28], strides = [1, 1]} : vector<1x30xf32> to vector<1x28xf32>
    %171 = vector.broadcast %169 : vector<8x1xf32> to vector<8x28xf32>
    %172 = vector.broadcast %170 : vector<1x28xf32> to vector<8x28xf32>
    %173 = arith.mulf %171, %172 : vector<8x28xf32>
    %174 = arith.addf %167, %173 : vector<8x28xf32>
    %175 = vector.extract_strided_slice %90 {offsets = [0, 13], sizes = [8, 1], strides = [1, 1]} : vector<8x24xf32> to vector<8x1xf32>
    %176 = vector.extract_strided_slice %168 {offsets = [0, 1], sizes = [1, 28], strides = [1, 1]} : vector<1x30xf32> to vector<1x28xf32>
    %177 = vector.broadcast %175 : vector<8x1xf32> to vector<8x28xf32>
    %178 = vector.broadcast %176 : vector<1x28xf32> to vector<8x28xf32>
    %179 = arith.mulf %177, %178 : vector<8x28xf32>
    %180 = arith.addf %174, %179 : vector<8x28xf32>
    %181 = vector.extract_strided_slice %90 {offsets = [0, 14], sizes = [8, 1], strides = [1, 1]} : vector<8x24xf32> to vector<8x1xf32>
    %182 = vector.extract_strided_slice %168 {offsets = [0, 2], sizes = [1, 28], strides = [1, 1]} : vector<1x30xf32> to vector<1x28xf32>
    %183 = vector.broadcast %181 : vector<8x1xf32> to vector<8x28xf32>
    %184 = vector.broadcast %182 : vector<1x28xf32> to vector<8x28xf32>
    %185 = arith.mulf %183, %184 : vector<8x28xf32>
    %186 = arith.addf %180, %185 : vector<8x28xf32>
    %187 = vector.extract_strided_slice %89 {offsets = [5, 0], sizes = [1, 30], strides = [1, 1]} : vector<8x30xf32> to vector<1x30xf32>
    %188 = vector.extract_strided_slice %90 {offsets = [0, 15], sizes = [8, 1], strides = [1, 1]} : vector<8x24xf32> to vector<8x1xf32>
    %189 = vector.extract_strided_slice %187 {offsets = [0, 0], sizes = [1, 28], strides = [1, 1]} : vector<1x30xf32> to vector<1x28xf32>
    %190 = vector.broadcast %188 : vector<8x1xf32> to vector<8x28xf32>
    %191 = vector.broadcast %189 : vector<1x28xf32> to vector<8x28xf32>
    %192 = arith.mulf %190, %191 : vector<8x28xf32>
    %193 = arith.addf %186, %192 : vector<8x28xf32>
    %194 = vector.extract_strided_slice %90 {offsets = [0, 16], sizes = [8, 1], strides = [1, 1]} : vector<8x24xf32> to vector<8x1xf32>
    %195 = vector.extract_strided_slice %187 {offsets = [0, 1], sizes = [1, 28], strides = [1, 1]} : vector<1x30xf32> to vector<1x28xf32>
    %196 = vector.broadcast %194 : vector<8x1xf32> to vector<8x28xf32>
    %197 = vector.broadcast %195 : vector<1x28xf32> to vector<8x28xf32>
    %198 = arith.mulf %196, %197 : vector<8x28xf32>
    %199 = arith.addf %193, %198 : vector<8x28xf32>
    %200 = vector.extract_strided_slice %90 {offsets = [0, 17], sizes = [8, 1], strides = [1, 1]} : vector<8x24xf32> to vector<8x1xf32>
    %201 = vector.extract_strided_slice %187 {offsets = [0, 2], sizes = [1, 28], strides = [1, 1]} : vector<1x30xf32> to vector<1x28xf32>
    %202 = vector.broadcast %200 : vector<8x1xf32> to vector<8x28xf32>
    %203 = vector.broadcast %201 : vector<1x28xf32> to vector<8x28xf32>
    %204 = arith.mulf %202, %203 : vector<8x28xf32>
    %205 = arith.addf %199, %204 : vector<8x28xf32>
    %206 = vector.extract_strided_slice %89 {offsets = [6, 0], sizes = [1, 30], strides = [1, 1]} : vector<8x30xf32> to vector<1x30xf32>
    %207 = vector.extract_strided_slice %90 {offsets = [0, 18], sizes = [8, 1], strides = [1, 1]} : vector<8x24xf32> to vector<8x1xf32>
    %208 = vector.extract_strided_slice %206 {offsets = [0, 0], sizes = [1, 28], strides = [1, 1]} : vector<1x30xf32> to vector<1x28xf32>
    %209 = vector.broadcast %207 : vector<8x1xf32> to vector<8x28xf32>
    %210 = vector.broadcast %208 : vector<1x28xf32> to vector<8x28xf32>
    %211 = arith.mulf %209, %210 : vector<8x28xf32>
    %212 = arith.addf %205, %211 : vector<8x28xf32>
    %213 = vector.extract_strided_slice %90 {offsets = [0, 19], sizes = [8, 1], strides = [1, 1]} : vector<8x24xf32> to vector<8x1xf32>
    %214 = vector.extract_strided_slice %206 {offsets = [0, 1], sizes = [1, 28], strides = [1, 1]} : vector<1x30xf32> to vector<1x28xf32>
    %215 = vector.broadcast %213 : vector<8x1xf32> to vector<8x28xf32>
    %216 = vector.broadcast %214 : vector<1x28xf32> to vector<8x28xf32>
    %217 = arith.mulf %215, %216 : vector<8x28xf32>
    %218 = arith.addf %212, %217 : vector<8x28xf32>
    %219 = vector.extract_strided_slice %90 {offsets = [0, 20], sizes = [8, 1], strides = [1, 1]} : vector<8x24xf32> to vector<8x1xf32>
    %220 = vector.extract_strided_slice %206 {offsets = [0, 2], sizes = [1, 28], strides = [1, 1]} : vector<1x30xf32> to vector<1x28xf32>
    %221 = vector.broadcast %219 : vector<8x1xf32> to vector<8x28xf32>
    %222 = vector.broadcast %220 : vector<1x28xf32> to vector<8x28xf32>
    %223 = arith.mulf %221, %222 : vector<8x28xf32>
    %224 = arith.addf %218, %223 : vector<8x28xf32>
    %225 = vector.extract_strided_slice %89 {offsets = [7, 0], sizes = [1, 30], strides = [1, 1]} : vector<8x30xf32> to vector<1x30xf32>
    %226 = vector.extract_strided_slice %90 {offsets = [0, 21], sizes = [8, 1], strides = [1, 1]} : vector<8x24xf32> to vector<8x1xf32>
    %227 = vector.extract_strided_slice %225 {offsets = [0, 0], sizes = [1, 28], strides = [1, 1]} : vector<1x30xf32> to vector<1x28xf32>
    %228 = vector.broadcast %226 : vector<8x1xf32> to vector<8x28xf32>
    %229 = vector.broadcast %227 : vector<1x28xf32> to vector<8x28xf32>
    %230 = arith.mulf %228, %229 : vector<8x28xf32>
    %231 = arith.addf %224, %230 : vector<8x28xf32>
    %232 = vector.extract_strided_slice %90 {offsets = [0, 22], sizes = [8, 1], strides = [1, 1]} : vector<8x24xf32> to vector<8x1xf32>
    %233 = vector.extract_strided_slice %225 {offsets = [0, 1], sizes = [1, 28], strides = [1, 1]} : vector<1x30xf32> to vector<1x28xf32>
    %234 = vector.broadcast %232 : vector<8x1xf32> to vector<8x28xf32>
    %235 = vector.broadcast %233 : vector<1x28xf32> to vector<8x28xf32>
    %236 = arith.mulf %234, %235 : vector<8x28xf32>
    %237 = arith.addf %231, %236 : vector<8x28xf32>
    %238 = vector.extract_strided_slice %90 {offsets = [0, 23], sizes = [8, 1], strides = [1, 1]} : vector<8x24xf32> to vector<8x1xf32>
    %239 = vector.extract_strided_slice %225 {offsets = [0, 2], sizes = [1, 28], strides = [1, 1]} : vector<1x30xf32> to vector<1x28xf32>
    %240 = vector.broadcast %238 : vector<8x1xf32> to vector<8x28xf32>
    %241 = vector.broadcast %239 : vector<1x28xf32> to vector<8x28xf32>
    %242 = arith.mulf %240, %241 : vector<8x28xf32>
    %243 = arith.addf %237, %242 : vector<8x28xf32>
    %c0_31 = arith.constant 0 : index
    %c0_32 = arith.constant 0 : index
    %244 = vector.load %arg10[%c0_31, %c0_32] : memref<8x1xf32, #tpu.memory_space<vmem>>, vector<8x1xf32>
    %245 = vector.broadcast %244 : vector<8x1xf32> to vector<8x28xf32>
    %246 = arith.addf %243, %245 : vector<8x28xf32>
    %247 = vector.extract_strided_slice %246 {offsets = [0, 0], sizes = [8, 27], strides = [1, 1]} : vector<8x28xf32> to vector<8x27xf32>
    %248 = vector.extract_strided_slice %246 {offsets = [0, 1], sizes = [8, 27], strides = [1, 1]} : vector<8x28xf32> to vector<8x27xf32>
    %249 = arith.maximumf %247, %248 : vector<8x27xf32>
    %c0_33 = arith.constant 0 : index
    %c0_34 = arith.constant 0 : index
    %250 = vector.load %arg13[%c0_33, %c0_34] : memref<27x14xf32, #tpu.memory_space<vmem>>, vector<27x14xf32>
    %cst_35 = arith.constant dense<0.000000e+00> : vector<8x14xf32>
    %251 = tpu.matmul %249, %250, %cst_35 {dimension_numbers = #tpu.dot_dimension_numbers<[1], [0], [0], [1], [0, 0, 1, 1], [], []>, precision = #tpu.contract_precision<fp32>} : vector<8x27xf32>, vector<27x14xf32>, vector<8x14xf32> -> vector<8x14xf32>
    %252 = vector.shape_cast %251 : vector<8x14xf32> to vector<1x8x14xf32>
    %cst_36 = arith.constant dense<0.000000e+00> : vector<1xf32>
    %253 = vector.multi_reduction <add>, %252, %cst_36 [1, 2] : vector<1x8x14xf32> to vector<1xf32>
    %254 = vector.shape_cast %253 : vector<1xf32> to vector<1x1x1xf32>
    %255 = vector.extract %254[0, 0, 0] : f32 from vector<1x1x1xf32>
    %cst_37 = arith.constant 1.120000e+02 : f32
    %256 = arith.divf %255, %cst_37 : f32
    %257 = vector.broadcast %256 : f32 to vector<8x14xf32>
    %258 = arith.subf %251, %257 : vector<8x14xf32>
    %259 = arith.mulf %258, %258 : vector<8x14xf32>
    %260 = vector.shape_cast %259 : vector<8x14xf32> to vector<1x8x14xf32>
    %cst_38 = arith.constant dense<0.000000e+00> : vector<1xf32>
    %261 = vector.multi_reduction <add>, %260, %cst_38 [1, 2] : vector<1x8x14xf32> to vector<1xf32>
    %262 = vector.shape_cast %261 : vector<1xf32> to vector<1x1x1xf32>
    %263 = vector.extract %262[0, 0, 0] : f32 from vector<1x1x1xf32>
    %cst_39 = arith.constant 1.120000e+02 : f32
    %264 = arith.divf %263, %cst_39 : f32
    %265 = vector.broadcast %256 : f32 to vector<8x14xf32>
    %266 = arith.subf %251, %265 : vector<8x14xf32>
    %cst_40 = arith.constant 9.99999974E-6 : f32
    %267 = arith.addf %264, %cst_40 : f32
    %268 = math.rsqrt %267 : f32
    %269 = vector.broadcast %268 : f32 to vector<8x14xf32>
    %270 = arith.mulf %266, %269 : vector<8x14xf32>
    %c0_41 = arith.constant 0 : index
    %c0_42 = arith.constant 0 : index
    %271 = vector.load %arg11[%c0_41, %c0_42] : memref<8x14xf32, #tpu.memory_space<vmem>>, vector<8x14xf32>
    %272 = arith.mulf %270, %271 : vector<8x14xf32>
    %c0_43 = arith.constant 0 : index
    %c0_44 = arith.constant 0 : index
    %273 = vector.load %arg12[%c0_43, %c0_44] : memref<8x14xf32, #tpu.memory_space<vmem>>, vector<8x14xf32>
    %274 = arith.addf %272, %273 : vector<8x14xf32>
    %cst_45 = arith.constant 0.000000e+00 : f32
    %275 = vector.broadcast %cst_45 : f32 to vector<8x14xf32>
    %276 = arith.maximumf %274, %275 : vector<8x14xf32>
    %c1 = arith.constant 1 : index
    %c0_46 = arith.constant 0 : index
    %c0_47 = arith.constant 0 : index
    %277 = vector.load %arg1[%c1, %c0_46, %c0_47] : memref<2x1x64xf32, #tpu.memory_space<vmem>>, vector<1x1x64xf32>
    %278 = vector.shape_cast %277 : vector<1x1x64xf32> to vector<1x64xf32>
    %279 = vector.shape_cast %278 : vector<1x64xf32> to vector<1x1x64xf32>
    %cst_48 = arith.constant dense<0.000000e+00> : vector<1xf32>
    %280 = vector.multi_reduction <add>, %279, %cst_48 [1, 2] : vector<1x1x64xf32> to vector<1xf32>
    %281 = vector.shape_cast %280 : vector<1xf32> to vector<1x1x1xf32>
    %282 = vector.extract %281[0, 0, 0] : f32 from vector<1x1x1xf32>
    %cst_49 = arith.constant 6.400000e+01 : f32
    %283 = arith.divf %282, %cst_49 : f32
    %284 = vector.broadcast %283 : f32 to vector<1x64xf32>
    %285 = arith.subf %278, %284 : vector<1x64xf32>
    %286 = arith.mulf %285, %285 : vector<1x64xf32>
    %287 = vector.shape_cast %286 : vector<1x64xf32> to vector<1x1x64xf32>
    %cst_50 = arith.constant dense<0.000000e+00> : vector<1xf32>
    %288 = vector.multi_reduction <add>, %287, %cst_50 [1, 2] : vector<1x1x64xf32> to vector<1xf32>
    %289 = vector.shape_cast %288 : vector<1xf32> to vector<1x1x1xf32>
    %290 = vector.extract %289[0, 0, 0] : f32 from vector<1x1x1xf32>
    %cst_51 = arith.constant 6.400000e+01 : f32
    %291 = arith.divf %290, %cst_51 : f32
    %292 = vector.broadcast %283 : f32 to vector<1x64xf32>
    %293 = arith.subf %278, %292 : vector<1x64xf32>
    %cst_52 = arith.constant 9.99999974E-6 : f32
    %294 = arith.addf %291, %cst_52 : f32
    %295 = math.rsqrt %294 : f32
    %296 = vector.broadcast %295 : f32 to vector<1x64xf32>
    %297 = arith.mulf %293, %296 : vector<1x64xf32>
    %c0_53 = arith.constant 0 : index
    %c0_54 = arith.constant 0 : index
    %298 = vector.load %arg2[%c0_53, %c0_54] : memref<1x64xf32, #tpu.memory_space<vmem>>, vector<1x64xf32>
    %299 = arith.mulf %297, %298 : vector<1x64xf32>
    %c0_55 = arith.constant 0 : index
    %c0_56 = arith.constant 0 : index
    %300 = vector.load %arg3[%c0_55, %c0_56] : memref<1x64xf32, #tpu.memory_space<vmem>>, vector<1x64xf32>
    %301 = arith.addf %299, %300 : vector<1x64xf32>
    %c0_57 = arith.constant 0 : index
    %c0_58 = arith.constant 0 : index
    %302 = vector.load %arg4[%c0_57, %c0_58] : memref<8x5xf32, #tpu.memory_space<vmem>>, vector<8x5xf32>
    %cst_59 = arith.constant 0.000000e+00 : f32
    %303 = vector.broadcast %cst_59 : f32 to vector<8x60xf32>
    %304 = vector.extract_strided_slice %302 {offsets = [0, 0], sizes = [8, 1], strides = [1, 1]} : vector<8x5xf32> to vector<8x1xf32>
    %305 = vector.extract_strided_slice %301 {offsets = [0, 0], sizes = [1, 60], strides = [1, 1]} : vector<1x64xf32> to vector<1x60xf32>
    %306 = vector.broadcast %304 : vector<8x1xf32> to vector<8x60xf32>
    %307 = vector.broadcast %305 : vector<1x60xf32> to vector<8x60xf32>
    %308 = arith.mulf %306, %307 : vector<8x60xf32>
    %309 = arith.addf %303, %308 : vector<8x60xf32>
    %310 = vector.extract_strided_slice %302 {offsets = [0, 1], sizes = [8, 1], strides = [1, 1]} : vector<8x5xf32> to vector<8x1xf32>
    %311 = vector.extract_strided_slice %301 {offsets = [0, 1], sizes = [1, 60], strides = [1, 1]} : vector<1x64xf32> to vector<1x60xf32>
    %312 = vector.broadcast %310 : vector<8x1xf32> to vector<8x60xf32>
    %313 = vector.broadcast %311 : vector<1x60xf32> to vector<8x60xf32>
    %314 = arith.mulf %312, %313 : vector<8x60xf32>
    %315 = arith.addf %309, %314 : vector<8x60xf32>
    %316 = vector.extract_strided_slice %302 {offsets = [0, 2], sizes = [8, 1], strides = [1, 1]} : vector<8x5xf32> to vector<8x1xf32>
    %317 = vector.extract_strided_slice %301 {offsets = [0, 2], sizes = [1, 60], strides = [1, 1]} : vector<1x64xf32> to vector<1x60xf32>
    %318 = vector.broadcast %316 : vector<8x1xf32> to vector<8x60xf32>
    %319 = vector.broadcast %317 : vector<1x60xf32> to vector<8x60xf32>
    %320 = arith.mulf %318, %319 : vector<8x60xf32>
    %321 = arith.addf %315, %320 : vector<8x60xf32>
    %322 = vector.extract_strided_slice %302 {offsets = [0, 3], sizes = [8, 1], strides = [1, 1]} : vector<8x5xf32> to vector<8x1xf32>
    %323 = vector.extract_strided_slice %301 {offsets = [0, 3], sizes = [1, 60], strides = [1, 1]} : vector<1x64xf32> to vector<1x60xf32>
    %324 = vector.broadcast %322 : vector<8x1xf32> to vector<8x60xf32>
    %325 = vector.broadcast %323 : vector<1x60xf32> to vector<8x60xf32>
    %326 = arith.mulf %324, %325 : vector<8x60xf32>
    %327 = arith.addf %321, %326 : vector<8x60xf32>
    %328 = vector.extract_strided_slice %302 {offsets = [0, 4], sizes = [8, 1], strides = [1, 1]} : vector<8x5xf32> to vector<8x1xf32>
    %329 = vector.extract_strided_slice %301 {offsets = [0, 4], sizes = [1, 60], strides = [1, 1]} : vector<1x64xf32> to vector<1x60xf32>
    %330 = vector.broadcast %328 : vector<8x1xf32> to vector<8x60xf32>
    %331 = vector.broadcast %329 : vector<1x60xf32> to vector<8x60xf32>
    %332 = arith.mulf %330, %331 : vector<8x60xf32>
    %333 = arith.addf %327, %332 : vector<8x60xf32>
    %c0_60 = arith.constant 0 : index
    %c0_61 = arith.constant 0 : index
    %334 = vector.load %arg5[%c0_60, %c0_61] : memref<8x1xf32, #tpu.memory_space<vmem>>, vector<8x1xf32>
    %335 = vector.broadcast %334 : vector<8x1xf32> to vector<8x60xf32>
    %336 = arith.addf %333, %335 : vector<8x60xf32>
    %337 = vector.extract_strided_slice %336 {offsets = [0, 0], sizes = [8, 59], strides = [1, 1]} : vector<8x60xf32> to vector<8x59xf32>
    %338 = vector.extract_strided_slice %336 {offsets = [0, 1], sizes = [8, 59], strides = [1, 1]} : vector<8x60xf32> to vector<8x59xf32>
    %339 = arith.maximumf %337, %338 : vector<8x59xf32>
    %c0_62 = arith.constant 0 : index
    %c0_63 = arith.constant 0 : index
    %340 = vector.load %arg8[%c0_62, %c0_63] : memref<59x30xf32, #tpu.memory_space<vmem>>, vector<59x30xf32>
    %cst_64 = arith.constant dense<0.000000e+00> : vector<8x30xf32>
    %341 = tpu.matmul %339, %340, %cst_64 {dimension_numbers = #tpu.dot_dimension_numbers<[1], [0], [0], [1], [0, 0, 1, 1], [], []>, precision = #tpu.contract_precision<fp32>} : vector<8x59xf32>, vector<59x30xf32>, vector<8x30xf32> -> vector<8x30xf32>
    %342 = vector.shape_cast %341 : vector<8x30xf32> to vector<1x8x30xf32>
    %cst_65 = arith.constant dense<0.000000e+00> : vector<1xf32>
    %343 = vector.multi_reduction <add>, %342, %cst_65 [1, 2] : vector<1x8x30xf32> to vector<1xf32>
    %344 = vector.shape_cast %343 : vector<1xf32> to vector<1x1x1xf32>
    %345 = vector.extract %344[0, 0, 0] : f32 from vector<1x1x1xf32>
    %cst_66 = arith.constant 2.400000e+02 : f32
    %346 = arith.divf %345, %cst_66 : f32
    %347 = vector.broadcast %346 : f32 to vector<8x30xf32>
    %348 = arith.subf %341, %347 : vector<8x30xf32>
    %349 = arith.mulf %348, %348 : vector<8x30xf32>
    %350 = vector.shape_cast %349 : vector<8x30xf32> to vector<1x8x30xf32>
    %cst_67 = arith.constant dense<0.000000e+00> : vector<1xf32>
    %351 = vector.multi_reduction <add>, %350, %cst_67 [1, 2] : vector<1x8x30xf32> to vector<1xf32>
    %352 = vector.shape_cast %351 : vector<1xf32> to vector<1x1x1xf32>
    %353 = vector.extract %352[0, 0, 0] : f32 from vector<1x1x1xf32>
    %cst_68 = arith.constant 2.400000e+02 : f32
    %354 = arith.divf %353, %cst_68 : f32
    %355 = vector.broadcast %346 : f32 to vector<8x30xf32>
    %356 = arith.subf %341, %355 : vector<8x30xf32>
    %cst_69 = arith.constant 9.99999974E-6 : f32
    %357 = arith.addf %354, %cst_69 : f32
    %358 = math.rsqrt %357 : f32
    %359 = vector.broadcast %358 : f32 to vector<8x30xf32>
    %360 = arith.mulf %356, %359 : vector<8x30xf32>
    %c0_70 = arith.constant 0 : index
    %c0_71 = arith.constant 0 : index
    %361 = vector.load %arg6[%c0_70, %c0_71] : memref<8x30xf32, #tpu.memory_space<vmem>>, vector<8x30xf32>
    %362 = arith.mulf %360, %361 : vector<8x30xf32>
    %c0_72 = arith.constant 0 : index
    %c0_73 = arith.constant 0 : index
    %363 = vector.load %arg7[%c0_72, %c0_73] : memref<8x30xf32, #tpu.memory_space<vmem>>, vector<8x30xf32>
    %364 = arith.addf %362, %363 : vector<8x30xf32>
    %cst_74 = arith.constant 0.000000e+00 : f32
    %365 = vector.broadcast %cst_74 : f32 to vector<8x30xf32>
    %366 = arith.maximumf %364, %365 : vector<8x30xf32>
    %c0_75 = arith.constant 0 : index
    %c0_76 = arith.constant 0 : index
    %367 = vector.load %arg9[%c0_75, %c0_76] : memref<8x24xf32, #tpu.memory_space<vmem>>, vector<8x24xf32>
    %cst_77 = arith.constant 0.000000e+00 : f32
    %368 = vector.broadcast %cst_77 : f32 to vector<8x28xf32>
    %369 = vector.extract_strided_slice %366 {offsets = [0, 0], sizes = [1, 30], strides = [1, 1]} : vector<8x30xf32> to vector<1x30xf32>
    %370 = vector.extract_strided_slice %367 {offsets = [0, 0], sizes = [8, 1], strides = [1, 1]} : vector<8x24xf32> to vector<8x1xf32>
    %371 = vector.extract_strided_slice %369 {offsets = [0, 0], sizes = [1, 28], strides = [1, 1]} : vector<1x30xf32> to vector<1x28xf32>
    %372 = vector.broadcast %370 : vector<8x1xf32> to vector<8x28xf32>
    %373 = vector.broadcast %371 : vector<1x28xf32> to vector<8x28xf32>
    %374 = arith.mulf %372, %373 : vector<8x28xf32>
    %375 = arith.addf %368, %374 : vector<8x28xf32>
    %376 = vector.extract_strided_slice %367 {offsets = [0, 1], sizes = [8, 1], strides = [1, 1]} : vector<8x24xf32> to vector<8x1xf32>
    %377 = vector.extract_strided_slice %369 {offsets = [0, 1], sizes = [1, 28], strides = [1, 1]} : vector<1x30xf32> to vector<1x28xf32>
    %378 = vector.broadcast %376 : vector<8x1xf32> to vector<8x28xf32>
    %379 = vector.broadcast %377 : vector<1x28xf32> to vector<8x28xf32>
    %380 = arith.mulf %378, %379 : vector<8x28xf32>
    %381 = arith.addf %375, %380 : vector<8x28xf32>
    %382 = vector.extract_strided_slice %367 {offsets = [0, 2], sizes = [8, 1], strides = [1, 1]} : vector<8x24xf32> to vector<8x1xf32>
    %383 = vector.extract_strided_slice %369 {offsets = [0, 2], sizes = [1, 28], strides = [1, 1]} : vector<1x30xf32> to vector<1x28xf32>
    %384 = vector.broadcast %382 : vector<8x1xf32> to vector<8x28xf32>
    %385 = vector.broadcast %383 : vector<1x28xf32> to vector<8x28xf32>
    %386 = arith.mulf %384, %385 : vector<8x28xf32>
    %387 = arith.addf %381, %386 : vector<8x28xf32>
    %388 = vector.extract_strided_slice %366 {offsets = [1, 0], sizes = [1, 30], strides = [1, 1]} : vector<8x30xf32> to vector<1x30xf32>
    %389 = vector.extract_strided_slice %367 {offsets = [0, 3], sizes = [8, 1], strides = [1, 1]} : vector<8x24xf32> to vector<8x1xf32>
    %390 = vector.extract_strided_slice %388 {offsets = [0, 0], sizes = [1, 28], strides = [1, 1]} : vector<1x30xf32> to vector<1x28xf32>
    %391 = vector.broadcast %389 : vector<8x1xf32> to vector<8x28xf32>
    %392 = vector.broadcast %390 : vector<1x28xf32> to vector<8x28xf32>
    %393 = arith.mulf %391, %392 : vector<8x28xf32>
    %394 = arith.addf %387, %393 : vector<8x28xf32>
    %395 = vector.extract_strided_slice %367 {offsets = [0, 4], sizes = [8, 1], strides = [1, 1]} : vector<8x24xf32> to vector<8x1xf32>
    %396 = vector.extract_strided_slice %388 {offsets = [0, 1], sizes = [1, 28], strides = [1, 1]} : vector<1x30xf32> to vector<1x28xf32>
    %397 = vector.broadcast %395 : vector<8x1xf32> to vector<8x28xf32>
    %398 = vector.broadcast %396 : vector<1x28xf32> to vector<8x28xf32>
    %399 = arith.mulf %397, %398 : vector<8x28xf32>
    %400 = arith.addf %394, %399 : vector<8x28xf32>
    %401 = vector.extract_strided_slice %367 {offsets = [0, 5], sizes = [8, 1], strides = [1, 1]} : vector<8x24xf32> to vector<8x1xf32>
    %402 = vector.extract_strided_slice %388 {offsets = [0, 2], sizes = [1, 28], strides = [1, 1]} : vector<1x30xf32> to vector<1x28xf32>
    %403 = vector.broadcast %401 : vector<8x1xf32> to vector<8x28xf32>
    %404 = vector.broadcast %402 : vector<1x28xf32> to vector<8x28xf32>
    %405 = arith.mulf %403, %404 : vector<8x28xf32>
    %406 = arith.addf %400, %405 : vector<8x28xf32>
    %407 = vector.extract_strided_slice %366 {offsets = [2, 0], sizes = [1, 30], strides = [1, 1]} : vector<8x30xf32> to vector<1x30xf32>
    %408 = vector.extract_strided_slice %367 {offsets = [0, 6], sizes = [8, 1], strides = [1, 1]} : vector<8x24xf32> to vector<8x1xf32>
    %409 = vector.extract_strided_slice %407 {offsets = [0, 0], sizes = [1, 28], strides = [1, 1]} : vector<1x30xf32> to vector<1x28xf32>
    %410 = vector.broadcast %408 : vector<8x1xf32> to vector<8x28xf32>
    %411 = vector.broadcast %409 : vector<1x28xf32> to vector<8x28xf32>
    %412 = arith.mulf %410, %411 : vector<8x28xf32>
    %413 = arith.addf %406, %412 : vector<8x28xf32>
    %414 = vector.extract_strided_slice %367 {offsets = [0, 7], sizes = [8, 1], strides = [1, 1]} : vector<8x24xf32> to vector<8x1xf32>
    %415 = vector.extract_strided_slice %407 {offsets = [0, 1], sizes = [1, 28], strides = [1, 1]} : vector<1x30xf32> to vector<1x28xf32>
    %416 = vector.broadcast %414 : vector<8x1xf32> to vector<8x28xf32>
    %417 = vector.broadcast %415 : vector<1x28xf32> to vector<8x28xf32>
    %418 = arith.mulf %416, %417 : vector<8x28xf32>
    %419 = arith.addf %413, %418 : vector<8x28xf32>
    %420 = vector.extract_strided_slice %367 {offsets = [0, 8], sizes = [8, 1], strides = [1, 1]} : vector<8x24xf32> to vector<8x1xf32>
    %421 = vector.extract_strided_slice %407 {offsets = [0, 2], sizes = [1, 28], strides = [1, 1]} : vector<1x30xf32> to vector<1x28xf32>
    %422 = vector.broadcast %420 : vector<8x1xf32> to vector<8x28xf32>
    %423 = vector.broadcast %421 : vector<1x28xf32> to vector<8x28xf32>
    %424 = arith.mulf %422, %423 : vector<8x28xf32>
    %425 = arith.addf %419, %424 : vector<8x28xf32>
    %426 = vector.extract_strided_slice %366 {offsets = [3, 0], sizes = [1, 30], strides = [1, 1]} : vector<8x30xf32> to vector<1x30xf32>
    %427 = vector.extract_strided_slice %367 {offsets = [0, 9], sizes = [8, 1], strides = [1, 1]} : vector<8x24xf32> to vector<8x1xf32>
    %428 = vector.extract_strided_slice %426 {offsets = [0, 0], sizes = [1, 28], strides = [1, 1]} : vector<1x30xf32> to vector<1x28xf32>
    %429 = vector.broadcast %427 : vector<8x1xf32> to vector<8x28xf32>
    %430 = vector.broadcast %428 : vector<1x28xf32> to vector<8x28xf32>
    %431 = arith.mulf %429, %430 : vector<8x28xf32>
    %432 = arith.addf %425, %431 : vector<8x28xf32>
    %433 = vector.extract_strided_slice %367 {offsets = [0, 10], sizes = [8, 1], strides = [1, 1]} : vector<8x24xf32> to vector<8x1xf32>
    %434 = vector.extract_strided_slice %426 {offsets = [0, 1], sizes = [1, 28], strides = [1, 1]} : vector<1x30xf32> to vector<1x28xf32>
    %435 = vector.broadcast %433 : vector<8x1xf32> to vector<8x28xf32>
    %436 = vector.broadcast %434 : vector<1x28xf32> to vector<8x28xf32>
    %437 = arith.mulf %435, %436 : vector<8x28xf32>
    %438 = arith.addf %432, %437 : vector<8x28xf32>
    %439 = vector.extract_strided_slice %367 {offsets = [0, 11], sizes = [8, 1], strides = [1, 1]} : vector<8x24xf32> to vector<8x1xf32>
    %440 = vector.extract_strided_slice %426 {offsets = [0, 2], sizes = [1, 28], strides = [1, 1]} : vector<1x30xf32> to vector<1x28xf32>
    %441 = vector.broadcast %439 : vector<8x1xf32> to vector<8x28xf32>
    %442 = vector.broadcast %440 : vector<1x28xf32> to vector<8x28xf32>
    %443 = arith.mulf %441, %442 : vector<8x28xf32>
    %444 = arith.addf %438, %443 : vector<8x28xf32>
    %445 = vector.extract_strided_slice %366 {offsets = [4, 0], sizes = [1, 30], strides = [1, 1]} : vector<8x30xf32> to vector<1x30xf32>
    %446 = vector.extract_strided_slice %367 {offsets = [0, 12], sizes = [8, 1], strides = [1, 1]} : vector<8x24xf32> to vector<8x1xf32>
    %447 = vector.extract_strided_slice %445 {offsets = [0, 0], sizes = [1, 28], strides = [1, 1]} : vector<1x30xf32> to vector<1x28xf32>
    %448 = vector.broadcast %446 : vector<8x1xf32> to vector<8x28xf32>
    %449 = vector.broadcast %447 : vector<1x28xf32> to vector<8x28xf32>
    %450 = arith.mulf %448, %449 : vector<8x28xf32>
    %451 = arith.addf %444, %450 : vector<8x28xf32>
    %452 = vector.extract_strided_slice %367 {offsets = [0, 13], sizes = [8, 1], strides = [1, 1]} : vector<8x24xf32> to vector<8x1xf32>
    %453 = vector.extract_strided_slice %445 {offsets = [0, 1], sizes = [1, 28], strides = [1, 1]} : vector<1x30xf32> to vector<1x28xf32>
    %454 = vector.broadcast %452 : vector<8x1xf32> to vector<8x28xf32>
    %455 = vector.broadcast %453 : vector<1x28xf32> to vector<8x28xf32>
    %456 = arith.mulf %454, %455 : vector<8x28xf32>
    %457 = arith.addf %451, %456 : vector<8x28xf32>
    %458 = vector.extract_strided_slice %367 {offsets = [0, 14], sizes = [8, 1], strides = [1, 1]} : vector<8x24xf32> to vector<8x1xf32>
    %459 = vector.extract_strided_slice %445 {offsets = [0, 2], sizes = [1, 28], strides = [1, 1]} : vector<1x30xf32> to vector<1x28xf32>
    %460 = vector.broadcast %458 : vector<8x1xf32> to vector<8x28xf32>
    %461 = vector.broadcast %459 : vector<1x28xf32> to vector<8x28xf32>
    %462 = arith.mulf %460, %461 : vector<8x28xf32>
    %463 = arith.addf %457, %462 : vector<8x28xf32>
    %464 = vector.extract_strided_slice %366 {offsets = [5, 0], sizes = [1, 30], strides = [1, 1]} : vector<8x30xf32> to vector<1x30xf32>
    %465 = vector.extract_strided_slice %367 {offsets = [0, 15], sizes = [8, 1], strides = [1, 1]} : vector<8x24xf32> to vector<8x1xf32>
    %466 = vector.extract_strided_slice %464 {offsets = [0, 0], sizes = [1, 28], strides = [1, 1]} : vector<1x30xf32> to vector<1x28xf32>
    %467 = vector.broadcast %465 : vector<8x1xf32> to vector<8x28xf32>
    %468 = vector.broadcast %466 : vector<1x28xf32> to vector<8x28xf32>
    %469 = arith.mulf %467, %468 : vector<8x28xf32>
    %470 = arith.addf %463, %469 : vector<8x28xf32>
    %471 = vector.extract_strided_slice %367 {offsets = [0, 16], sizes = [8, 1], strides = [1, 1]} : vector<8x24xf32> to vector<8x1xf32>
    %472 = vector.extract_strided_slice %464 {offsets = [0, 1], sizes = [1, 28], strides = [1, 1]} : vector<1x30xf32> to vector<1x28xf32>
    %473 = vector.broadcast %471 : vector<8x1xf32> to vector<8x28xf32>
    %474 = vector.broadcast %472 : vector<1x28xf32> to vector<8x28xf32>
    %475 = arith.mulf %473, %474 : vector<8x28xf32>
    %476 = arith.addf %470, %475 : vector<8x28xf32>
    %477 = vector.extract_strided_slice %367 {offsets = [0, 17], sizes = [8, 1], strides = [1, 1]} : vector<8x24xf32> to vector<8x1xf32>
    %478 = vector.extract_strided_slice %464 {offsets = [0, 2], sizes = [1, 28], strides = [1, 1]} : vector<1x30xf32> to vector<1x28xf32>
    %479 = vector.broadcast %477 : vector<8x1xf32> to vector<8x28xf32>
    %480 = vector.broadcast %478 : vector<1x28xf32> to vector<8x28xf32>
    %481 = arith.mulf %479, %480 : vector<8x28xf32>
    %482 = arith.addf %476, %481 : vector<8x28xf32>
    %483 = vector.extract_strided_slice %366 {offsets = [6, 0], sizes = [1, 30], strides = [1, 1]} : vector<8x30xf32> to vector<1x30xf32>
    %484 = vector.extract_strided_slice %367 {offsets = [0, 18], sizes = [8, 1], strides = [1, 1]} : vector<8x24xf32> to vector<8x1xf32>
    %485 = vector.extract_strided_slice %483 {offsets = [0, 0], sizes = [1, 28], strides = [1, 1]} : vector<1x30xf32> to vector<1x28xf32>
    %486 = vector.broadcast %484 : vector<8x1xf32> to vector<8x28xf32>
    %487 = vector.broadcast %485 : vector<1x28xf32> to vector<8x28xf32>
    %488 = arith.mulf %486, %487 : vector<8x28xf32>
    %489 = arith.addf %482, %488 : vector<8x28xf32>
    %490 = vector.extract_strided_slice %367 {offsets = [0, 19], sizes = [8, 1], strides = [1, 1]} : vector<8x24xf32> to vector<8x1xf32>
    %491 = vector.extract_strided_slice %483 {offsets = [0, 1], sizes = [1, 28], strides = [1, 1]} : vector<1x30xf32> to vector<1x28xf32>
    %492 = vector.broadcast %490 : vector<8x1xf32> to vector<8x28xf32>
    %493 = vector.broadcast %491 : vector<1x28xf32> to vector<8x28xf32>
    %494 = arith.mulf %492, %493 : vector<8x28xf32>
    %495 = arith.addf %489, %494 : vector<8x28xf32>
    %496 = vector.extract_strided_slice %367 {offsets = [0, 20], sizes = [8, 1], strides = [1, 1]} : vector<8x24xf32> to vector<8x1xf32>
    %497 = vector.extract_strided_slice %483 {offsets = [0, 2], sizes = [1, 28], strides = [1, 1]} : vector<1x30xf32> to vector<1x28xf32>
    %498 = vector.broadcast %496 : vector<8x1xf32> to vector<8x28xf32>
    %499 = vector.broadcast %497 : vector<1x28xf32> to vector<8x28xf32>
    %500 = arith.mulf %498, %499 : vector<8x28xf32>
    %501 = arith.addf %495, %500 : vector<8x28xf32>
    %502 = vector.extract_strided_slice %366 {offsets = [7, 0], sizes = [1, 30], strides = [1, 1]} : vector<8x30xf32> to vector<1x30xf32>
    %503 = vector.extract_strided_slice %367 {offsets = [0, 21], sizes = [8, 1], strides = [1, 1]} : vector<8x24xf32> to vector<8x1xf32>
    %504 = vector.extract_strided_slice %502 {offsets = [0, 0], sizes = [1, 28], strides = [1, 1]} : vector<1x30xf32> to vector<1x28xf32>
    %505 = vector.broadcast %503 : vector<8x1xf32> to vector<8x28xf32>
    %506 = vector.broadcast %504 : vector<1x28xf32> to vector<8x28xf32>
    %507 = arith.mulf %505, %506 : vector<8x28xf32>
    %508 = arith.addf %501, %507 : vector<8x28xf32>
    %509 = vector.extract_strided_slice %367 {offsets = [0, 22], sizes = [8, 1], strides = [1, 1]} : vector<8x24xf32> to vector<8x1xf32>
    %510 = vector.extract_strided_slice %502 {offsets = [0, 1], sizes = [1, 28], strides = [1, 1]} : vector<1x30xf32> to vector<1x28xf32>
    %511 = vector.broadcast %509 : vector<8x1xf32> to vector<8x28xf32>
    %512 = vector.broadcast %510 : vector<1x28xf32> to vector<8x28xf32>
    %513 = arith.mulf %511, %512 : vector<8x28xf32>
    %514 = arith.addf %508, %513 : vector<8x28xf32>
    %515 = vector.extract_strided_slice %367 {offsets = [0, 23], sizes = [8, 1], strides = [1, 1]} : vector<8x24xf32> to vector<8x1xf32>
    %516 = vector.extract_strided_slice %502 {offsets = [0, 2], sizes = [1, 28], strides = [1, 1]} : vector<1x30xf32> to vector<1x28xf32>
    %517 = vector.broadcast %515 : vector<8x1xf32> to vector<8x28xf32>
    %518 = vector.broadcast %516 : vector<1x28xf32> to vector<8x28xf32>
    %519 = arith.mulf %517, %518 : vector<8x28xf32>
    %520 = arith.addf %514, %519 : vector<8x28xf32>
    %c0_78 = arith.constant 0 : index
    %c0_79 = arith.constant 0 : index
    %521 = vector.load %arg10[%c0_78, %c0_79] : memref<8x1xf32, #tpu.memory_space<vmem>>, vector<8x1xf32>
    %522 = vector.broadcast %521 : vector<8x1xf32> to vector<8x28xf32>
    %523 = arith.addf %520, %522 : vector<8x28xf32>
    %524 = vector.extract_strided_slice %523 {offsets = [0, 0], sizes = [8, 27], strides = [1, 1]} : vector<8x28xf32> to vector<8x27xf32>
    %525 = vector.extract_strided_slice %523 {offsets = [0, 1], sizes = [8, 27], strides = [1, 1]} : vector<8x28xf32> to vector<8x27xf32>
    %526 = arith.maximumf %524, %525 : vector<8x27xf32>
    %c0_80 = arith.constant 0 : index
    %c0_81 = arith.constant 0 : index
    %527 = vector.load %arg13[%c0_80, %c0_81] : memref<27x14xf32, #tpu.memory_space<vmem>>, vector<27x14xf32>
    %cst_82 = arith.constant dense<0.000000e+00> : vector<8x14xf32>
    %528 = tpu.matmul %526, %527, %cst_82 {dimension_numbers = #tpu.dot_dimension_numbers<[1], [0], [0], [1], [0, 0, 1, 1], [], []>, precision = #tpu.contract_precision<fp32>} : vector<8x27xf32>, vector<27x14xf32>, vector<8x14xf32> -> vector<8x14xf32>
    %529 = vector.shape_cast %528 : vector<8x14xf32> to vector<1x8x14xf32>
    %cst_83 = arith.constant dense<0.000000e+00> : vector<1xf32>
    %530 = vector.multi_reduction <add>, %529, %cst_83 [1, 2] : vector<1x8x14xf32> to vector<1xf32>
    %531 = vector.shape_cast %530 : vector<1xf32> to vector<1x1x1xf32>
    %532 = vector.extract %531[0, 0, 0] : f32 from vector<1x1x1xf32>
    %cst_84 = arith.constant 1.120000e+02 : f32
    %533 = arith.divf %532, %cst_84 : f32
    %534 = vector.broadcast %533 : f32 to vector<8x14xf32>
    %535 = arith.subf %528, %534 : vector<8x14xf32>
    %536 = arith.mulf %535, %535 : vector<8x14xf32>
    %537 = vector.shape_cast %536 : vector<8x14xf32> to vector<1x8x14xf32>
    %cst_85 = arith.constant dense<0.000000e+00> : vector<1xf32>
    %538 = vector.multi_reduction <add>, %537, %cst_85 [1, 2] : vector<1x8x14xf32> to vector<1xf32>
    %539 = vector.shape_cast %538 : vector<1xf32> to vector<1x1x1xf32>
    %540 = vector.extract %539[0, 0, 0] : f32 from vector<1x1x1xf32>
    %cst_86 = arith.constant 1.120000e+02 : f32
    %541 = arith.divf %540, %cst_86 : f32
    %542 = vector.broadcast %533 : f32 to vector<8x14xf32>
    %543 = arith.subf %528, %542 : vector<8x14xf32>
    %cst_87 = arith.constant 9.99999974E-6 : f32
    %544 = arith.addf %541, %cst_87 : f32
    %545 = math.rsqrt %544 : f32
    %546 = vector.broadcast %545 : f32 to vector<8x14xf32>
    %547 = arith.mulf %543, %546 : vector<8x14xf32>
    %c0_88 = arith.constant 0 : index
    %c0_89 = arith.constant 0 : index
    %548 = vector.load %arg11[%c0_88, %c0_89] : memref<8x14xf32, #tpu.memory_space<vmem>>, vector<8x14xf32>
    %549 = arith.mulf %547, %548 : vector<8x14xf32>
    %c0_90 = arith.constant 0 : index
    %c0_91 = arith.constant 0 : index
    %550 = vector.load %arg12[%c0_90, %c0_91] : memref<8x14xf32, #tpu.memory_space<vmem>>, vector<8x14xf32>
    %551 = arith.addf %549, %550 : vector<8x14xf32>
    %cst_92 = arith.constant 0.000000e+00 : f32
    %552 = vector.broadcast %cst_92 : f32 to vector<8x14xf32>
    %553 = arith.maximumf %551, %552 : vector<8x14xf32>
    %554 = vector.shape_cast %276 : vector<8x14xf32> to vector<1x8x14xf32>
    %555 = vector.shape_cast %553 : vector<8x14xf32> to vector<1x8x14xf32>
    %556 = tpu.concatenate %554, %555 in 0 : vector<1x8x14xf32>, vector<1x8x14xf32> -> vector<2x8x14xf32>
    %c0_93 = arith.constant 0 : index
    %c0_94 = arith.constant 0 : index
    %c0_95 = arith.constant 0 : index
    %557 = vector.load %arg14[%c0_93, %c0_94, %c0_95] : memref<2x8x14xf32, #tpu.memory_space<vmem>>, vector<2x8x14xf32>
    tpu.vector_store %arg14[%c0_93, %c0_94, %c0_95], %556 {strides = array<i32>} : memref<2x8x14xf32, #tpu.memory_space<vmem>>, vector<2x8x14xf32>,
    return
  }
  func.func @transform_0(%arg0: i32) -> (i32, i32, i32) {
    %c0_i32 = arith.constant 0 : i32
    %c0_i32_0 = arith.constant 0 : i32
    %c0_i32_1 = arith.constant 0 : i32
    %c0_i32_2 = arith.constant 0 : i32
    return %c0_i32, %c0_i32_0, %c0_i32_1 : i32, i32, i32
  }
  func.func @transform_1(%arg0: i32) -> (i32, i32) {
    %c0_i32 = arith.constant 0 : i32
    %c0_i32_0 = arith.constant 0 : i32
    %c0_i32_1 = arith.constant 0 : i32
    return %c0_i32, %c0_i32_0 : i32, i32
  }
  func.func @transform_2(%arg0: i32) -> (i32, i32) {
    %c0_i32 = arith.constant 0 : i32
    %c0_i32_0 = arith.constant 0 : i32
    %c0_i32_1 = arith.constant 0 : i32
    return %c0_i32, %c0_i32_0 : i32, i32
  }
  func.func @transform_3(%arg0: i32) -> (i32, i32) {
    %c0_i32 = arith.constant 0 : i32
    %c0_i32_0 = arith.constant 0 : i32
    %c0_i32_1 = arith.constant 0 : i32
    return %c0_i32, %c0_i32_0 : i32, i32
  }
  func.func @transform_4(%arg0: i32) -> (i32, i32) {
    %c0_i32 = arith.constant 0 : i32
    %c0_i32_0 = arith.constant 0 : i32
    %c0_i32_1 = arith.constant 0 : i32
    return %c0_i32, %c0_i32_0 : i32, i32
  }
  func.func @transform_5(%arg0: i32) -> (i32, i32) {
    %c0_i32 = arith.constant 0 : i32
    %c0_i32_0 = arith.constant 0 : i32
    %c0_i32_1 = arith.constant 0 : i32
    return %c0_i32, %c0_i32_0 : i32, i32
  }
  func.func @transform_6(%arg0: i32) -> (i32, i32) {
    %c0_i32 = arith.constant 0 : i32
    %c0_i32_0 = arith.constant 0 : i32
    %c0_i32_1 = arith.constant 0 : i32
    return %c0_i32, %c0_i32_0 : i32, i32
  }
  func.func @transform_7(%arg0: i32) -> (i32, i32) {
    %c0_i32 = arith.constant 0 : i32
    %c0_i32_0 = arith.constant 0 : i32
    %c0_i32_1 = arith.constant 0 : i32
    return %c0_i32, %c0_i32_0 : i32, i32
  }
  func.func @transform_8(%arg0: i32) -> (i32, i32) {
    %c0_i32 = arith.constant 0 : i32
    %c0_i32_0 = arith.constant 0 : i32
    %c0_i32_1 = arith.constant 0 : i32
    return %c0_i32, %c0_i32_0 : i32, i32
  }
  func.func @transform_9(%arg0: i32) -> (i32, i32) {
    %c0_i32 = arith.constant 0 : i32
    %c0_i32_0 = arith.constant 0 : i32
    %c0_i32_1 = arith.constant 0 : i32
    return %c0_i32, %c0_i32_0 : i32, i32
  }
  func.func @transform_10(%arg0: i32) -> (i32, i32) {
    %c0_i32 = arith.constant 0 : i32
    %c0_i32_0 = arith.constant 0 : i32
    %c0_i32_1 = arith.constant 0 : i32
    return %c0_i32, %c0_i32_0 : i32, i32
  }
  func.func @transform_11(%arg0: i32) -> (i32, i32) {
    %c0_i32 = arith.constant 0 : i32
    %c0_i32_0 = arith.constant 0 : i32
    %c0_i32_1 = arith.constant 0 : i32
    return %c0_i32, %c0_i32_0 : i32, i32
  }
  func.func @transform_12(%arg0: i32) -> (i32, i32) {
    %c0_i32 = arith.constant 0 : i32
    %c0_i32_0 = arith.constant 0 : i32
    %c0_i32_1 = arith.constant 0 : i32
    return %c0_i32, %c0_i32_0 : i32, i32
  }
  func.func @transform_13(%arg0: i32) -> (i32, i32, i32) {
    %c0_i32 = arith.constant 0 : i32
    %c0_i32_0 = arith.constant 0 : i32
    %c0_i32_1 = arith.constant 0 : i32
    %c0_i32_2 = arith.constant 0 : i32
    return %c0_i32, %c0_i32_0, %c0_i32_1 : i32, i32, i32
  }
}

</mosaic_0001>

<bundles_post_ra>
// kernel: tpu_custom_call.1
= control target key start
LH: loop header
LB: loop body
LE: loop exit
PB: predicated region body
PF: predicated region fallthrough
CT: control target
= control target key end

     0   :  { %vm46_vm0 = vcmask 516096   ;;  %s4567_s0 = inlined_call_operand.vmem [shape: f32[2,1,64], index: 0, kind: input, shape index: {}]   ;;  %s4568_s1 = inlined_call_operand.vmem [shape: f32[1,64], index: 1, kind: input, shape index: {}]   ;;  %s4569_s2 = inlined_call_operand.vmem [shape: f32[1,64], index: 2, kind: input, shape index: {}]   ;;  %s4570_s3 = inlined_call_operand.vmem [shape: f32[8,5], index: 3, kind: input, shape index: {}]   ;;  %s4571_s4 = inlined_call_operand.vmem [shape: f32[8,1], index: 4, kind: input, shape index: {}]   ;;  %s4572_s5 = inlined_call_operand.vmem [shape: f32[8,30], index: 5, kind: input, shape index: {}]   ;;  %s4573_s6 = inlined_call_operand.vmem [shape: f32[8,30], index: 6, kind: input, shape index: {}]   ;;  %s4574_s7 = inlined_call_operand.vmem [shape: f32[59,30], index: 7, kind: input, shape index: {}]   ;;  %s4575_s8 = inlined_call_operand.vmem [shape: f32[8,24], index: 8, kind: input, shape index: {}]   ;;  %s4576_s9 = inlined_call_operand.vmem [shape: f32[8,1], index: 9, kind: input, shape index: {}]   ;;  %s4577_s10 = inlined_call_operand.vmem [shape: f32[8,14], index: 10, kind: input, shape index: {}]   ;;  %s4578_s11 = inlined_call_operand.vmem [shape: f32[8,14], index: 11, kind: input, shape index: {}]   ;;  %s4579_s12 = inlined_call_operand.vmem [shape: f32[27,14], index: 12, kind: input, shape index: {}]   ;;  %s4580_s13 = inlined_call_operand.hbm [shape: f32[2,8,14], index: 13, kind: output, shape index: {}]  }
   0x1   :  { %v45_v0 = vld [vmem:[%s4567_s0] sm:$0x1] }
   0x2   :  { %18 = vsyncpa [#allocation3], 0  ;;  %v47_v1 = vsel %vm46_vm0, %v45_v0, 0.0  ;;  %v86_v2 = vld [vmem:[%s4570_s3] sm:$0xff]  ;;  %v3810_v3 = vmov 1   ;;  %v3811_v4 = vmov 2   ;;  %v93_v29 = vlaneseq }
   0x3   :  { %48 = vadd.xlane.f32.xlu0 %v47_v1  ;;  %3741 = vset.pattern.permute.xlu1 %v3810_v3  ;;  %v3812_v16 = vmov 4   ;;  %v3813_v17 = vmov 3   ;;  %v3814_v18 = vmov 0   ;;  %v140_v19 = vld [vmem:[%s4571_s4] sm:$0xff]  ;;  %s3815_s22 = smov 127   ;;  %v3957_v45 = vld [vmem:[%s4574_s7 + $0x8] sm:$0xff] }
   0x4   :  { %101 = vperm.xlu1 %3741, %v86_v2   ;;  %3743 = vset.pattern.permute.xlu0 %v3813_v17  ;;  %v3928_v30 = vshrl.u32 %v93_v29, 7  ;;  %v82_v32 = vld [vmem:[%s4568_s1] sm:$0x1]  ;;  %s3816_s27 = smov 126   ;;  %v4590_v46 = vmov 0.0|0.0   ;;  %v172_v48 = vand.u32 4294901760, %v3957_v45 }
   0x5   :  { %v84_v34 = vld [vmem:[%s4569_s2] sm:$0x1]  ;;  %3415 = vmatprep.subr.bf16.mxu0 %v4590_v46  ;;  %3487 = vmatprep.subr.bf16.mxu1 %v4590_v46  ;;  %s3818_s28 = smov 125   ;;  %v154_v56 = vld [vmem:[%s4574_s7 + $0x10] sm:$0xff]  ;;  %v155_v57 = vld [vmem:[%s4574_s7 + $0x18] sm:$0xff]  ;;  %vm164_vm1 = vcmask 1042432  }
   0x6   :  { %v3937_v36 = vsub.s32 0, %v3928_v30  ;;  %v3952_v44 = vld [vmem:[%s4574_s7] sm:$0xff]  ;;  %v175_v58 = vand.u32 4294901760, %v154_v56  ;;  %v178_v59 = vand.u32 4294901760, %v155_v57  ;;  %v157_v63 = vld [vmem:[%s4574_s7 + $0x28] sm:$0xff]  ;;  %vm3820_vm2 = vmmov 0  }
   0x7   :  { %v169_v47 = vand.u32 4294901760, %v3952_v44  ;;  %v156_v62 = vld [vmem:[%s4574_s7 + $0x20] sm:$0xff]  ;;  %vm160_vm3 = vcmask 482304   ;;  %vm705_vm4 = vcmask 244736   ;;  %vm1004_vm5 = vcmask 220160  }
   0x8   :  { %3742 = vset.pattern.permute.xlu1 %v3811_v4  ;;  %v3988_v60 = vpack.c.bf16 %v178_v59, %v175_v58  ;;  %v181_v1 = vand.u32 4294901760, %v156_v62  ;;  %vm1496_vm6 = vcmask 113664  }
   0x9   :  { %111 = vperm.xlu1 %3742, %v86_v2   ;;  %v3969_v50 = vpack.c.bf16 %v172_v48, %v169_v47 }
   0xb   :  { %3417 = vmatpush3.bf16.msra.mxu0 %v3969_v50 }
   0xc   :  { %3418 = vmatprep.subr.bf16.mxu0 %v4590_v46 }
   0xd   :  { %3744 = vset.pattern.permute.xlu1 %v3812_v16 }
   0xe   :  { %131 = vperm.xlu1 %3744, %v86_v2  }
   0xf   :  { %3420 = vmatpush3.bf16.msra.mxu0 %v3988_v60 }
  0x10   :  { %3421 = vmatprep.subr.bf16.mxu0 %v4590_v46 }
  0x12   :  { %3745 = vset.pattern.permute.xlu1 %v3814_v18 }
  0x13   :  { %89 = vperm.xlu1 %3745, %v86_v2  }
  0x17   :  { %143 = vperm.xlu1 %3745, %v140_v19   ;;  %v267_v19 = vsub.f32 %v154_v56, %v175_v58 }
  0x1b   :  { %3746 = vset.pattern.permute.xlu1 %v3810_v3 }
  0x83   :  { %v3939_v38 = vpop.permute.xlu1 %101 }
  0x88   :  { %v3944_v41 = vpop.permute.xlu1 %111 }
  0x8d   :  { %v3973_v51 = vpop.permute.xlu1 %131 }
  0x90   :  { %v49_v5 = vpop.xlane.xlu0 %48 }
  0x91   :  { %v50_v6 = vrot.slane %v49_v5, 4 }
  0x92   :  { %v3978_v53 = vpop.permute.xlu1 %89 }
  0x93   :  { %v51_v7 = vadd.f32 %v50_v6, %v49_v5  ;;  %v159_v5 = vld [vmem:[%s4574_s7 + $0x38] sm:$0x7] }
  0x95   :  { %v52_v8 = vrot.slane %v51_v7, 2 }
  0x96   :  { %v3980_v54 = vpop.permute.xlu1 %143 }
  0x97   :  { %v53_v9 = vadd.f32 %v52_v8, %v51_v7  ;;  %v158_v7 = vld [vmem:[%s4574_s7 + $0x30] sm:$0xff]  ;;  %v166_v8 = vsel %vm164_vm1, %v159_v5, 0 }
  0x99   :  { %v54_v10 = vrot.slane %v53_v9, 1 }
  0x9b   :  { %v55_v11 = vadd.f32 %v54_v10, %v53_v9  ;;  %v187_v10 = vand.u32 4294901760, %v158_v7 }
  0x9d   :  { %3671 = vpush %v55_v11  ;;  %v190_v11 = vand.u32 4294901760, %v166_v8 }
  0xce   :  { %s3672_s29 = spop %3671 }
  0xcf   :  { %s59_s30 = smul.f32 0.015625, %s3672_s29  ;;  %s3819_s29 = smov 124  }
  0xd1   :  { %v60_v12 = vstv %s59_s30 }
  0xd2   :  { %v61_v13 = vsub.f32 %v45_v0, %v60_v12 }
  0xd4   :  { %v62_v14 = vmul.f32 %v61_v13, %v61_v13 }
  0xd6   :  { %v63_v15 = vsel %vm46_vm0, %v62_v14, 0.0  ;;  %v4588_v14 = vmov 0.0  }
  0xd7   :  { %64 = vadd.xlane.f32.xlu0 %v63_v15  ;;  %3071 = vmatprep.mubr.msk.f32.mxu0 %vm3820_vm2, %v4588_v14 }
  0xd8   :  { %3177 = vmatprep.mubr.msk.f32.mxu1 %vm3820_vm2, %v4588_v14 }
  0xed   :  { %121 = vperm.xlu0 %3743, %v86_v2   ;;  %v184_v2 = vand.u32 4294901760, %v157_v63 }
  0xf1   :  { %3747 = vset.pattern.permute.xlu0 %v3811_v4  ;;  %v3999_v4 = vpack.c.bf16 %v184_v2, %v181_v1 }
  0xf3   :  { %3423 = vmatpush3.bf16.msra.mxu0 %v3999_v4 }
  0xf4   :  { %3424 = vmatprep.subr.bf16.mxu0 %v4590_v46 }
 0x164   :  { %v65_v20 = vpop.xlane.xlu0 %64 }
 0x165   :  { %v66_v21 = vrot.slane %v65_v20, 4 }
 0x167   :  { %v67_v22 = vadd.f32 %v66_v21, %v65_v20  ;;  %v274_v20 = vsub.f32 %v155_v57, %v178_v59 }
 0x169   :  { %v68_v23 = vrot.slane %v67_v22, 2 }
 0x16b   :  { %v69_v24 = vadd.f32 %v68_v23, %v67_v22  ;;  %v268_v22 = vand.u32 4294901760, %v267_v19  ;;  %v275_v23 = vand.u32 4294901760, %v274_v20 }
 0x16c   :  { %v3947_v43 = vpop.permute.xlu0 %121 }
 0x16d   :  { %v70_v25 = vrot.slane %v69_v24, 1 }
 0x16f   :  { %v71_v26 = vadd.f32 %v70_v25, %v69_v24  ;;  %v269_v25 = vsub.f32 %v267_v19, %v268_v22 }
 0x171   :  { %3673 = vpush %v71_v26  ;;  %v276_v26 = vsub.f32 %v274_v20, %v275_v23  ;;  %v270_v29 = vand.u32 4294901760, %v269_v25 }
 0x1a2   :  { %s3674_s15 = spop %3673 }
 0x1a3   :  { %s75_s16 = smul.f32 0.015625, %s3674_s15 }
 0x1a5   :  { %s76_s17 = sadd.f32 1e-05, %s75_s16 }
 0x1a7   :  { %v77_v27 = vstv %s76_s17 }
 0x1a8   :  { %3772 = vrsqrt.f32 %v77_v27  ;;  %v281_v27 = vsub.f32 %v156_v62, %v181_v1 }
 0x1b2   :  { %v3773_v28 = vpop.eup %3772 }
 0x1b3   :  { %3675 = vpush %v3773_v28  ;;  %v288_v28 = vsub.f32 %v157_v63, %v184_v2  ;;  %v4026_v63 = vpack.c.bf16 %v274_v20, %v267_v19  ;;  %v4032_v2 = vpack.c.bf16 %v275_v23, %v268_v22 }
 0x1e4   :  { %s3676_s18 = spop %3675 }
 0x1e5   :  { %v80_v31 = vstv %s3676_s18 }
 0x1e6   :  { %v81_v33 = vmul.f32 %v80_v31, %v61_v13  ;;  %v4010_v13 = vpack.c.bf16 %v190_v11, %v187_v10  ;;  %v277_v31 = vand.u32 4294901760, %v276_v26 }
 0x1e8   :  { %v83_v35 = vmul.f32 %v82_v32, %v81_v33  ;;  %3426 = vmatpush3.bf16.msra.mxu0 %v4010_v13  ;;  %v282_v32 = vand.u32 4294901760, %v281_v27  ;;  %v289_v33 = vand.u32 4294901760, %v288_v28 }
 0x1e9   :  { %3427 = vmatprep.subr.bf16.mxu0 %v4590_v46 }
 0x1ea   :  { %v85_v37 = vadd.f32 %v84_v34, %v83_v35  ;;  %v4020_v34 = vpack.c.bf16 %v277_v31, %v270_v29  ;;  %v283_v35 = vsub.f32 %v281_v27, %v282_v32  ;;  %v4107_v29 = vld [vmem:[%s4575_s8] sm:$0xff]  ;;  %v3822_v31 = vmov 5  }
 0x1ec   :  { %v96_v39 = vrot.slane %v85_v37, %v3937_v36  ;;  %v295_v37 = vsub.f32 %v158_v7, %v187_v10  ;;  %v260_v7 = vsub.f32 %v3957_v45, %v172_v48 }
 0x1ee   :  { %v104_v40 = vmul.f32 %v3939_v38, %v96_v39  ;;  %v114_v42 = vmul.f32 %v3944_v41, %v96_v39  ;;  %v124_v49 = vmul.f32 %v3947_v43, %v96_v39  ;;  %v134_v52 = vmul.f32 %v3973_v51, %v96_v39 }
 0x1ef   :  { %v98_v0 = vmul.f32 %v96_v39, %v3978_v53  ;;  %v302_v39 = vsub.f32 %v166_v8, %v190_v11 }
 0x1f0   :  { %106 = vrot.lane.b32.xlu1 %v104_v40, %s3815_s22  ;;  %v290_v40 = vsub.f32 %v288_v28, %v289_v33 }
 0x1f1   :  { %v4030_v1 = vpack.c.bf16 %v302_v39, %v295_v37 }
 0x1f4   :  { %116 = vrot.lane.b32.xlu1 %v114_v42, %s3816_s27  ;;  %v284_v42 = vand.u32 4294901760, %v283_v35  ;;  %v3825_v35 = vmov 10  }
 0x1f8   :  { %126 = vrot.lane.b32.xlu1 %v124_v49, %s3818_s28  ;;  %v296_v49 = vand.u32 4294901760, %v295_v37 }
 0x1fa   :  { %v297_v56 = vsub.f32 %v295_v37, %v296_v49  ;;  %v3826_v37 = vmov 11  }
 0x1fc   :  { %136 = vrot.lane.b32.xlu1 %v134_v52, %s3819_s29  ;;  %v303_v52 = vand.u32 4294901760, %v302_v39  ;;  %v298_v59 = vand.u32 4294901760, %v297_v56 }
 0x1fe   :  { %v304_v57 = vsub.f32 %v302_v39, %v303_v52  ;;  %v4036_v5 = vpack.c.bf16 %v303_v52, %v296_v49  ;;  %v3828_v39 = vmov 14   ;;  %v3831_v49 = vmov 20  }
 0x262   :  { %v107_v55 = vpop.permute.xlu1 %106 }
 0x263   :  { %v109_v3 = vadd.f32 %v107_v55, %v98_v0  ;;  %v291_v55 = vand.u32 4294901760, %v290_v40  ;;  %v4028_v0 = vpack.c.bf16 %v288_v28, %v281_v27  ;;  %v3829_v40 = vmov 16  }
 0x265   :  { %v4022_v58 = vpack.c.bf16 %v291_v55, %v284_v42  ;;  %v3830_v42 = vmov 19  }
 0x266   :  { %v117_v61 = vpop.permute.xlu1 %116 }
 0x267   :  { %v119_v9 = vadd.f32 %v117_v61, %v109_v3  ;;  %v305_v61 = vand.u32 4294901760, %v304_v57  ;;  %v4034_v3 = vpack.c.bf16 %v289_v33, %v282_v32  ;;  %v3823_v32 = vmov 7  }
 0x268   :  { %v3824_v33 = vmov 8  }
 0x269   :  { %v4024_v62 = vpack.c.bf16 %v305_v61, %v298_v59 }
 0x26a   :  { %v127_v6 = vpop.permute.xlu1 %126 }
 0x26b   :  { %v129_v12 = vadd.f32 %v127_v6, %v119_v9  ;;  %v253_v6 = vsub.f32 %v3952_v44, %v169_v47  ;;  %v261_v9 = vand.u32 4294901760, %v260_v7 }
 0x26d   :  { %v254_v8 = vand.u32 4294901760, %v253_v6  ;;  %v262_v19 = vsub.f32 %v260_v7, %v261_v9  ;;  %v4056_v45 = vpack.c.bf16 %v260_v7, %v253_v6 }
 0x26e   :  { %v137_v15 = vpop.permute.xlu1 %136 }
 0x26f   :  { %v139_v21 = vadd.f32 %v137_v15, %v129_v12  ;;  %v255_v15 = vsub.f32 %v253_v6, %v254_v8  ;;  %v263_v23 = vand.u32 4294901760, %v262_v19  ;;  %v4078_v48 = vpack.c.bf16 %v261_v9, %v254_v8 }
 0x270   :  { %v3835_v19 = vmov 22  }
 0x271   :  { %v146_v24 = vadd.f32 %v3980_v54, %v139_v21  ;;  %v256_v22 = vand.u32 4294901760, %v255_v15  ;;  %v3834_v15 = vmov 17  }
 0x273   :  { %148 = vrot.lane.b32.xlu1 %v146_v24, %s3815_s22  ;;  %v4045_v44 = vpack.c.bf16 %v263_v23, %v256_v22 }
 0x2e5   :  { %v149_v10 = vpop.permute.xlu1 %148 }
 0x2e6   :  { %v151_v11 = vmax.f32 %v146_v24, %v149_v10 }
 0x2e8   :  { %v162_v12 = vsel %vm160_vm3, %v151_v11, 0  ;;  %v3832_v11 = vmov 23  }
 0x2e9   :  { %v241_v20 = vand.u32 4294901760, %v162_v12 }
 0x2eb   :  { %v242_v21 = vsub.f32 %v162_v12, %v241_v20  ;;  %v3833_v12 = vmov 6  }
 0x2ed   :  { %v243_v25 = vand.u32 4294901760, %v242_v21 }
 0x2ef   :  { %v244_v26 = vsub.f32 %v242_v21, %v243_v25 }
 0x2f1   :  { %v245_v47 = vand.u32 4294901760, %v244_v26 }
 0x2f3   :  { %3072 = vmatmul.mubr.f32.vlgmr.msra.gmra.mrb[0].mxu0 %v245_v47 }
 0x2f4   :  { %3429 = vmatpush3.bf16.msra.mxu0 %v4045_v44  ;;  %3090 = vmatprep.mubr.msk.f32.mxu0 %vm3820_vm2, %v4588_v14 }
 0x2f5   :  { %3430 = vmatprep.subr.bf16.mxu0 %v4590_v46 }
 0x2f8   :  { %3432 = vmatpush3.bf16.msra.mxu0 %v4020_v34 }
 0x2f9   :  { %3433 = vmatprep.subr.bf16.mxu0 %v4590_v46 }
 0x2fc   :  { %3435 = vmatpush3.bf16.msra.mxu0 %v4022_v58 }
 0x2fd   :  { %3436 = vmatprep.subr.bf16.mxu0 %v4590_v46 }
 0x300   :  { %3438 = vmatpush3.bf16.msra.mxu0 %v4024_v62 }
 0x301   :  { %3439 = vmatprep.subr.bf16.mxu0 %v4590_v46 }
 0x303   :  { %3091 = vmatmul.mubr.f32.vlgmr.msra.gmra.mrb[0].mxu0 %v241_v20 }
 0x304   :  { %3441 = vmatpush3.bf16.msra.mxu0 %v4056_v45  ;;  %3109 = vmatprep.mubr.msk.f32.mxu0 %vm3820_vm2, %v4588_v14 }
 0x305   :  { %3442 = vmatprep.subr.bf16.mxu0 %v4590_v46 }
 0x308   :  { %3444 = vmatpush3.bf16.msra.mxu0 %v4026_v63 }
 0x309   :  { %3445 = vmatprep.subr.bf16.mxu0 %v4590_v46 }
 0x30c   :  { %3447 = vmatpush3.bf16.msra.mxu0 %v4028_v0 }
 0x30d   :  { %3448 = vmatprep.subr.bf16.mxu0 %v4590_v46 }
 0x310   :  { %3450 = vmatpush3.bf16.msra.mxu0 %v4030_v1 }
 0x311   :  { %3451 = vmatprep.subr.bf16.mxu0 %v4590_v46 }
 0x313   :  { %3110 = vmatmul.mubr.f32.vlgmr.msra.gmra.mrb[0].mxu0 %v242_v21 }
 0x314   :  { %3453 = vmatpush3.bf16.msra.mxu0 %v3969_v50  ;;  %3128 = vmatprep.mubr.msk.f32.mxu0 %vm3820_vm2, %v4588_v14 }
 0x315   :  { %3454 = vmatprep.subr.bf16.mxu0 %v4590_v46 }
 0x318   :  { %3456 = vmatpush3.bf16.msra.mxu0 %v3988_v60 }
 0x319   :  { %3457 = vmatprep.subr.bf16.mxu0 %v4590_v46 }
 0x31c   :  { %3459 = vmatpush3.bf16.msra.mxu0 %v3999_v4 }
 0x31d   :  { %3460 = vmatprep.subr.bf16.mxu0 %v4590_v46 }
 0x320   :  { %3462 = vmatpush3.bf16.msra.mxu0 %v4010_v13 }
 0x321   :  { %3463 = vmatprep.subr.bf16.mxu0 %v4590_v46 }
 0x323   :  { %3129 = vmatmul.mubr.f32.vlgmr.msra.gmra.mrb[0].mxu0 %v243_v25 }
 0x324   :  { %3465 = vmatpush3.bf16.msra.mxu0 %v4078_v48  ;;  %3147 = vmatprep.mubr.msk.f32.mxu0 %vm3820_vm2, %v4588_v14 }
 0x325   :  { %3466 = vmatprep.subr.bf16.mxu0 %v4590_v46 }
 0x328   :  { %3468 = vmatpush3.bf16.msra.mxu0 %v4032_v2 }
 0x329   :  { %3469 = vmatprep.subr.bf16.mxu0 %v4590_v46 }
 0x32c   :  { %3471 = vmatpush3.bf16.msra.mxu0 %v4034_v3 }
 0x32d   :  { %3472 = vmatprep.subr.bf16.mxu0 %v4590_v46 }
 0x330   :  { %3474 = vmatpush3.bf16.msra.mxu0 %v4036_v5 }
 0x331   :  { %3475 = vmatprep.subr.bf16.mxu0 %v4590_v46 }
 0x333   :  { %3148 = vmatmul.mubr.f32.vlgmr.msra.gmra.mrb[0].mxu0 %v241_v20 }
 0x334   :  { %3477 = vmatpush3.bf16.msra.mxu0 %v3969_v50  ;;  %3166 = vmatprep.mubr.msk.f32.mxu0 %vm3820_vm2, %v4588_v14 }
 0x335   :  { %3478 = vmatprep.subr.bf16.mxu0 %v4590_v46 }
 0x338   :  { %3480 = vmatpush3.bf16.msra.mxu0 %v3988_v60 }
 0x339   :  { %3481 = vmatprep.subr.bf16.mxu0 %v4590_v46 }
 0x33c   :  { %3483 = vmatpush3.bf16.msra.mxu0 %v3999_v4 }
 0x33d   :  { %3484 = vmatprep.subr.bf16.mxu0 %v4590_v46 }
 0x340   :  { %3486 = vmatpush3.bf16.msra.mxu0 %v4010_v13 }
 0x341   :  { %3595 = vmatprep.subr.bf16.mxu0 %v4590_v46 }
 0x343   :  { %3167 = vmatmul.mubr.f32.vlgmr.msra.gmra.mrb[0].mxu0 %v241_v20  ;;  %v3836_v20 = vmov 9  }
 0x344   :  { %3357 = vmatprep.mubr.msk.f32.mxu0 %vm3820_vm2, %v4588_v14 }
 0x416   :  { %v701_v24 = vpop.f32.mrb[0].mxu0 }
 0x417   :  { %v3168_v27 = vpop.f32.mrb[1].mxu0  ;;  %v706_v28 = vsel %vm705_vm4, %v701_v24, 0.0 }
 0x418   :  { %707 = vadd.xlane.f32.xlu1 %v706_v28  ;;  %v3837_v27 = vmov 12  }
 0x429   :  { %759 = vperm.xlu1 %3746, %v4107_v29  }
 0x42d   :  { %3748 = vset.pattern.permute.xlu1 %v3812_v16  ;;  %v3827_v16 = vmov 13  }
 0x42e   :  { %789 = vperm.xlu1 %3748, %v4107_v29  }
 0x432   :  { %3749 = vset.pattern.permute.xlu1 %v3822_v31 }
 0x433   :  { %799 = vperm.xlu1 %3749, %v4107_v29  }
 0x437   :  { %3750 = vset.pattern.permute.xlu1 %v3823_v32 }
 0x438   :  { %819 = vperm.xlu1 %3750, %v4107_v29  }
 0x43c   :  { %3751 = vset.pattern.permute.xlu1 %v3824_v33 }
 0x43d   :  { %829 = vperm.xlu1 %3751, %v4107_v29  }
 0x441   :  { %3752 = vset.pattern.permute.xlu1 %v3825_v35 }
 0x442   :  { %849 = vperm.xlu1 %3752, %v4107_v29  }
 0x446   :  { %3753 = vset.pattern.permute.xlu1 %v3826_v37 }
 0x447   :  { %859 = vperm.xlu1 %3753, %v4107_v29  }
 0x44b   :  { %3754 = vset.pattern.permute.xlu1 %v3827_v16 }
 0x44c   :  { %879 = vperm.xlu1 %3754, %v4107_v29  }
 0x450   :  { %3755 = vset.pattern.permute.xlu1 %v3828_v39 }
 0x451   :  { %889 = vperm.xlu1 %3755, %v4107_v29  }
 0x455   :  { %3756 = vset.pattern.permute.xlu1 %v3829_v40  ;;  %v4149_v40 = vld [vmem:[%s4572_s5] sm:$0xff] }
 0x456   :  { %909 = vperm.xlu1 %3756, %v4107_v29  }
 0x45a   :  { %3758 = vset.pattern.permute.xlu1 %v3830_v42 }
 0x45b   :  { %939 = vperm.xlu1 %3758, %v4107_v29  }
 0x45f   :  { %3759 = vset.pattern.permute.xlu1 %v3831_v49  ;;  %v4154_v49 = vld [vmem:[%s4573_s6] sm:$0xff] }
 0x460   :  { %949 = vperm.xlu1 %3759, %v4107_v29  }
 0x464   :  { %3761 = vset.pattern.permute.xlu1 %v3832_v11 }
 0x465   :  { %979 = vperm.xlu1 %3761, %v4107_v29  }
 0x469   :  { %3762 = vset.pattern.permute.xlu1 %v3814_v18 }
 0x46a   :  { %749 = vperm.xlu1 %3762, %v4107_v29  }
 0x46e   :  { %3764 = vset.pattern.permute.xlu1 %v3833_v12  ;;  %v4586_v12 = vsub.s32 2, %v3928_v30 }
 0x46f   :  { %809 = vperm.xlu1 %3764, %v4107_v29  }
 0x473   :  { %3770 = vset.pattern.permute.xlu1 %v3814_v18 }
 0x4a5   :  { %v708_v52 = vpop.xlane.xlu1 %707 }
 0x4a6   :  { %v709_v55 = vrot.slane %v708_v52, 4 }
 0x4a8   :  { %v710_v56 = vadd.f32 %v709_v55, %v708_v52 }
 0x4a9   :  { %v4134_v31 = vpop.permute.xlu1 %759 }
 0x4aa   :  { %v711_v57 = vrot.slane %v710_v56, 2 }
 0x4ac   :  { %v712_v59 = vadd.f32 %v711_v57, %v710_v56 }
 0x4ad   :  { %v4136_v32 = vpop.permute.xlu1 %789 }
 0x4ae   :  { %v713_v61 = vrot.slane %v712_v59, 1 }
 0x4b0   :  { %v714_v6 = vadd.f32 %v713_v61, %v712_v59  ;;  %v4587_v59 = vsub.s32 1, %v3928_v30 }
 0x4b2   :  { %3677 = vpush %v714_v6  ;;  %v4138_v33 = vpop.permute.xlu1 %799 }
 0x4b7   :  { %v4140_v35 = vpop.permute.xlu1 %819 }
 0x4bc   :  { %v4142_v37 = vpop.permute.xlu1 %829 }
 0x4c1   :  { %v4144_v16 = vpop.permute.xlu1 %849 }
 0x4c6   :  { %v4157_v55 = vpop.permute.xlu1 %859 }
 0x4cb   :  { %v4164_v6 = vpop.permute.xlu1 %879 }
 0x4cc   :  { %4607 = vst [vmem:[#allocation5_spill] sm:$0xff] %v4164_v6 }
 0x4d0   :  { %v4178_v11 = vpop.permute.xlu1 %889 }
 0x4e3   :  { %s3678_s8 = spop %3677 }
 0x4e4   :  { %s718_s25 = smul.f32 0.004166667, %s3678_s8 }
 0x4e6   :  { %v719_v7 = vstv %s718_s25 }
 0x4e7   :  { %v720_v8 = vsub.f32 %v701_v24, %v719_v7 }
 0x4e9   :  { %v721_v9 = vmul.f32 %v720_v8, %v720_v8 }
 0x4eb   :  { %v722_v10 = vsel %vm705_vm4, %v721_v9, 0.0 }
 0x4ec   :  { %723 = vadd.xlane.f32.xlu0 %v722_v10 }
 0x502   :  { %769 = vperm.xlu0 %3747, %v4107_v29  }
 0x506   :  { %3757 = vset.pattern.permute.xlu0 %v3834_v15 }
 0x507   :  { %919 = vperm.xlu0 %3757, %v4107_v29  }
 0x50b   :  { %3760 = vset.pattern.permute.xlu0 %v3835_v19 }
 0x50c   :  { %969 = vperm.xlu0 %3760, %v4107_v29  }
 0x510   :  { %3763 = vset.pattern.permute.xlu0 %v3813_v17 }
 0x511   :  { %779 = vperm.xlu0 %3763, %v4107_v29  }
 0x515   :  { %3765 = vset.pattern.permute.xlu0 %v3836_v20 }
 0x516   :  { %839 = vperm.xlu0 %3765, %v4107_v29  }
 0x51a   :  { %3766 = vset.pattern.permute.xlu0 %v3837_v27 }
 0x579   :  { %v724_v21 = vpop.xlane.xlu0 %723 }
 0x57a   :  { %v725_v22 = vrot.slane %v724_v21, 4 }
 0x57c   :  { %v726_v23 = vadd.f32 %v725_v22, %v724_v21  ;;  %v4191_v21 = vpop.permute.xlu1 %909  ;;  %v3838_v22 = vmov 15  }
 0x57d   :  { %4608 = vst [vmem:[#allocation6_spill] sm:$0xff] %v4191_v21 }
 0x57e   :  { %v727_v25 = vrot.slane %v726_v23, 2 }
 0x580   :  { %v728_v26 = vadd.f32 %v727_v25, %v726_v23  ;;  %v4585_v23 = vsub.s32 3, %v3928_v30 }
 0x581   :  { %v4166_v7 = vpop.permute.xlu0 %769 }
 0x582   :  { %v729_v47 = vrot.slane %v728_v26, 1 }
 0x584   :  { %v730_v24 = vadd.f32 %v729_v47, %v728_v26  ;;  %v3839_v26 = vmov 18   ;;  %v4582_v47 = vsub.s32 6, %v3928_v30 }
 0x586   :  { %3679 = vpush %v730_v24  ;;  %v4200_v24 = vpop.permute.xlu1 %939 }
 0x587   :  { %4609 = vst [vmem:[#allocation7_spill] sm:$0xff] %v4200_v24 }
 0x5b7   :  { %s3680_s26 = spop %3679 }
 0x5b8   :  { %s734_s30 = smul.f32 0.004166667, %s3680_s26 }
 0x5ba   :  { %s735_s3 = sadd.f32 1e-05, %s734_s30 }
 0x5bc   :  { %v736_v17 = vstv %s735_s3 }
 0x5bd   :  { %3774 = vrsqrt.f32 %v736_v17 }
 0x5c7   :  { %v3775_v28 = vpop.eup %3774 }
 0x5c8   :  { %3681 = vpush %v3775_v28  ;;  %v4581_v28 = vsub.s32 7, %v3928_v30 }
 0x5f9   :  { %s3682_s14 = spop %3681 }
 0x5fa   :  { %v739_v39 = vstv %s3682_s14 }
 0x5fb   :  { %v740_v42 = vmul.f32 %v739_v39, %v720_v8 }
 0x5fd   :  { %v742_v52 = vmul.f32 %v4149_v40, %v740_v42  ;;  %v4213_v42 = vpop.permute.xlu0 %919 }
 0x5fe   :  { %4610 = vst [vmem:[#allocation8_spill] sm:$0xff] %v4213_v42 }
 0x5ff   :  { %v744_v56 = vadd.f32 %v4154_v49, %v742_v52  ;;  %v3840_v52 = vmov 21  }
 0x601   :  { %v745_v57 = vmax.f32 %v744_v56, 0.0 }
 0x603   :  { %v4162_v61 = vrot.slane %v745_v57, %v3937_v36  ;;  %v4170_v8 = vrot.slane %v745_v57, %v4587_v59  ;;  %v4187_v19 = vrot.slane %v745_v57, %v4586_v12  ;;  %v845_v27 = vrot.slane %v745_v57, %v4585_v23 }
 0x604   :  { %v4211_v39 = vrot.slane %v745_v57, %v4582_v47 }
 0x605   :  { %v772_v9 = vmul.f32 %v4166_v7, %v4162_v61  ;;  %v762_v10 = vmul.f32 %v4134_v31, %v4162_v61  ;;  %v792_v15 = vmul.f32 %v4136_v32, %v4170_v8  ;;  %v802_v20 = vmul.f32 %v4138_v33, %v4170_v8 }
 0x606   :  { %v822_v25 = vmul.f32 %v4140_v35, %v4187_v19  ;;  %v832_v17 = vmul.f32 %v4142_v37, %v4187_v19  ;;  %v852_v56 = vmul.f32 %v4144_v16, %v845_v27 }
 0x607   :  { %774 = vrot.lane.b32.xlu0 %v772_v9, %s3816_s27  ;;  %764 = vrot.lane.b32.xlu1 %v762_v10, %s3815_s22  ;;  %v4584_v9 = vsub.s32 4, %v3928_v30  ;;  %v4218_v10 = vpop.permute.xlu1 %949 }
 0x608   :  { %4611 = vst [vmem:[#allocation9_spill] sm:$0xff] %v4218_v10 }
 0x60b   :  { %869 = vperm.xlu0 %3766, %v4107_v29   ;;  %794 = vrot.lane.b32.xlu1 %v792_v15, %s3815_s22  ;;  %v4223_v15 = vrot.slane %v745_v57, %v4581_v28 }
 0x60f   :  { %3767 = vset.pattern.permute.xlu0 %v3838_v22  ;;  %804 = vrot.lane.b32.xlu1 %v802_v20, %s3816_s27  ;;  %v952_v20 = vmul.f32 %v4218_v10, %v4211_v39  ;;  %v862_v22 = vmul.f32 %v4157_v55, %v845_v27 }
 0x610   :  { %899 = vperm.xlu0 %3767, %v4107_v29  }
 0x613   :  { %824 = vrot.lane.b32.xlu1 %v822_v25, %s3815_s22  ;;  %v875_v25 = vrot.slane %v745_v57, %v4584_v9 }
 0x614   :  { %3768 = vset.pattern.permute.xlu0 %v3839_v26  ;;  %v4231_v26 = vpop.permute.xlu0 %969 }
 0x615   :  { %929 = vperm.xlu0 %3768, %v4107_v29   ;;  %4612 = vst [vmem:[#allocation10_spill] sm:$0xff] %v4231_v26 }
 0x617   :  { %834 = vrot.lane.b32.xlu1 %v832_v17, %s3816_s27  ;;  %v882_v17 = vmul.f32 %v4164_v6, %v875_v25 }
 0x619   :  { %3769 = vset.pattern.permute.xlu0 %v3840_v52  ;;  %v4583_v52 = vsub.s32 5, %v3928_v30 }
 0x61a   :  { %959 = vperm.xlu0 %3769, %v4107_v29   ;;  %v972_v29 = vmul.f32 %v4231_v26, %v4223_v15 }
 0x61b   :  { %854 = vrot.lane.b32.xlu1 %v852_v56, %s3815_s22  ;;  %v892_v56 = vmul.f32 %v4178_v11, %v875_v25 }
 0x61e   :  { %954 = vrot.lane.b32.xlu0 %v952_v20, %s3816_s27  ;;  %v905_v20 = vrot.slane %v745_v57, %v4583_v52  ;;  %v4255_v57 = vpop.permute.xlu1 %979 }
 0x61f   :  { %864 = vrot.lane.b32.xlu1 %v862_v22, %s3816_s27  ;;  %3771 = vset.pattern.permute.xlu0 %v3814_v18  ;;  %4613 = vst [vmem:[#allocation11_spill] sm:$0xff] %v4255_v57 }
 0x620   :  { %v912_v18 = vmul.f32 %v4191_v21, %v905_v20  ;;  %v922_v22 = vmul.f32 %v4213_v42, %v905_v20 }
 0x622   :  { %974 = vrot.lane.b32.xlu0 %v972_v29, %s3815_s22  ;;  %v942_v29 = vmul.f32 %v4200_v24, %v4211_v39 }
 0x623   :  { %884 = vrot.lane.b32.xlu1 %v882_v17, %s3815_s22  ;;  %v988_v17 = vld [vmem:[%s4576_s9] sm:$0xff] }
 0x627   :  { %894 = vrot.lane.b32.xlu1 %v892_v56, %s3816_s27  ;;  %v982_v56 = vmul.f32 %v4255_v57, %v4223_v15 }
 0x62b   :  { %914 = vrot.lane.b32.xlu1 %v912_v18, %s3815_s22  ;;  %v4260_v18 = vpop.permute.xlu1 %749 }
 0x62c   :  { %4614 = vst [vmem:[#allocation12_spill] sm:$0xff] %v4260_v18 }
 0x62f   :  { %924 = vrot.lane.b32.xlu1 %v922_v22, %s3816_s27  ;;  %v4262_v22 = vpop.permute.xlu0 %779  ;;  %v4264_v28 = vpop.permute.xlu1 %809 }
 0x630   :  { %4615 = vst [vmem:[#allocation13_spill] sm:$0xff] %v4264_v28  ;;  %v786_v23 = vmul.f32 %v4170_v8, %v4262_v22  ;;  %v816_v26 = vmul.f32 %v4187_v19, %v4264_v28 }
 0x633   :  { %944 = vrot.lane.b32.xlu1 %v942_v29, %s3815_s22  ;;  %v4266_v47 = vpop.permute.xlu0 %839  ;;  %v756_v29 = vmul.f32 %v4162_v61, %v4260_v18 }
 0x634   :  { %4616 = vst [vmem:[#allocation14_spill] sm:$0xff] %v4266_v47  ;;  %v846_v61 = vmul.f32 %v845_v27, %v4266_v47 }
 0x637   :  { %991 = vperm.xlu1 %3770, %v988_v17  }
 0x63b   :  { %984 = vrot.lane.b32.xlu1 %v982_v56, %s3816_s27 }
 0x679   :  { %v765_v52 = vpop.permute.xlu1 %764  ;;  %v775_v9 = vpop.permute.xlu0 %774 }
 0x67a   :  { %v767_v17 = vadd.f32 %v765_v52, %v756_v29 }
 0x67c   :  { %v777_v12 = vadd.f32 %v775_v9, %v767_v17 }
 0x67d   :  { %v795_v59 = vpop.permute.xlu1 %794 }
 0x67e   :  { %v787_v56 = vadd.f32 %v786_v23, %v777_v12 }
 0x680   :  { %v797_v14 = vadd.f32 %v795_v59, %v787_v56 }
 0x681   :  { %v805_v46 = vpop.permute.xlu1 %804 }
 0x682   :  { %v807_v57 = vadd.f32 %v805_v46, %v797_v14 }
 0x684   :  { %v817_v24 = vadd.f32 %v816_v26, %v807_v57 }
 0x685   :  { %v825_v10 = vpop.permute.xlu1 %824 }
 0x686   :  { %v827_v21 = vadd.f32 %v825_v10, %v817_v24 }
 0x689   :  { %v835_v42 = vpop.permute.xlu1 %834 }
 0x68a   :  { %v837_v52 = vadd.f32 %v835_v42, %v827_v21  ;;  %v4275_v6 = vpop.permute.xlu0 %869 }
 0x68b   :  { %4617 = vst [vmem:[#allocation15_spill] sm:$0xff] %v4275_v6  ;;  %v876_v59 = vmul.f32 %v875_v25, %v4275_v6 }
 0x68c   :  { %v847_v29 = vadd.f32 %v846_v61, %v837_v52 }
 0x68d   :  { %v855_v18 = vpop.permute.xlu1 %854 }
 0x68e   :  { %v857_v8 = vadd.f32 %v855_v18, %v847_v29 }
 0x68f   :  { %v4278_v14 = vpop.permute.xlu0 %899 }
 0x690   :  { %4618 = vst [vmem:[#allocation16_spill] sm:$0xff] %v4278_v14  ;;  %v906_v10 = vmul.f32 %v905_v20, %v4278_v14 }
 0x691   :  { %v865_v9 = vpop.permute.xlu1 %864 }
 0x692   :  { %v867_v12 = vadd.f32 %v865_v9, %v857_v8 }
 0x694   :  { %v877_v23 = vadd.f32 %v876_v59, %v867_v12  ;;  %v4281_v57 = vpop.permute.xlu0 %929 }
 0x695   :  { %v885_v17 = vpop.permute.xlu1 %884  ;;  %4619 = vst [vmem:[#allocation17_spill] sm:$0xff] %v4281_v57  ;;  %v936_v56 = vmul.f32 %v4211_v39, %v4281_v57  ;;  %v1001_v39 = vld [vmem:[%s4579_s12 + $0x8] sm:$0xff] }
 0x696   :  { %v887_v19 = vadd.f32 %v885_v17, %v877_v23  ;;  %v1000_v23 = vld [vmem:[%s4579_s12] sm:$0xff]  ;;  %v1002_v17 = vld [vmem:[%s4579_s12 + $0x10] sm:$0xff] }
 0x699   :  { %v895_v46 = vpop.permute.xlu1 %894  ;;  %v4285_v61 = vpop.permute.xlu0 %959 }
 0x69a   :  { %v897_v24 = vadd.f32 %v895_v46, %v887_v19  ;;  %4620 = vst [vmem:[#allocation18_spill] sm:$0xff] %v4285_v61  ;;  %v966_v20 = vmul.f32 %v4223_v15, %v4285_v61  ;;  %v1012_v46 = vand.u32 4294901760, %v1000_v23  ;;  %v1003_v15 = vld [vmem:[%s4579_s12 + $0x18] sm:$0x7] }
 0x69c   :  { %v907_v21 = vadd.f32 %v906_v10, %v897_v24  ;;  %v1015_v24 = vand.u32 4294901760, %v1001_v39  ;;  %v1018_v10 = vand.u32 4294901760, %v1002_v17 }
 0x69d   :  { %v915_v27 = vpop.permute.xlu1 %914  ;;  %v955_v8 = vpop.permute.xlu0 %954 }
 0x69e   :  { %v917_v26 = vadd.f32 %v915_v27, %v907_v21  ;;  %v1009_v21 = vsel %vm164_vm1, %v1003_v15, 0  ;;  %v1106_v61 = vsub.f32 %v1002_v17, %v1018_v10 }
 0x6a1   :  { %v925_v42 = vpop.permute.xlu1 %924  ;;  %v975_v19 = vpop.permute.xlu0 %974 }
 0x6a2   :  { %v927_v18 = vadd.f32 %v925_v42, %v917_v26  ;;  %v4304_v26 = vpack.c.bf16 %v1015_v24, %v1012_v46 }
 0x6a4   :  { %v937_v25 = vadd.f32 %v936_v56, %v927_v18  ;;  %v1021_v18 = vand.u32 4294901760, %v1009_v21  ;;  %v1092_v56 = vsub.f32 %v1000_v23, %v1012_v46  ;;  %3489 = vmatpush3.bf16.msra.mxu1 %v4304_v26  ;;  %3597 = vmatpush3.bf16.msra.mxu0 %v4304_v26 }
 0x6a5   :  { %v945_v52 = vpop.permute.xlu1 %944 }
 0x6a6   :  { %v947_v29 = vadd.f32 %v945_v52, %v937_v25  ;;  %v1099_v25 = vsub.f32 %v1001_v39, %v1015_v24  ;;  %v1113_v23 = vsub.f32 %v1009_v21, %v1021_v18  ;;  %v1107_v24 = vand.u32 4294901760, %v1106_v61 }
 0x6a8   :  { %v957_v9 = vadd.f32 %v955_v8, %v947_v29  ;;  %v4307_v29 = vpack.c.bf16 %v1021_v18, %v1018_v10  ;;  %v1093_v8 = vand.u32 4294901760, %v1092_v56  ;;  %v4322_v18 = vpack.c.bf16 %v1099_v25, %v1092_v56 }
 0x6aa   :  { %v967_v12 = vadd.f32 %v966_v20, %v957_v9  ;;  %v1100_v9 = vand.u32 4294901760, %v1099_v25 }
 0x6ac   :  { %v977_v27 = vadd.f32 %v975_v19, %v967_v12  ;;  %v4622_v12 = vmov 0.0|0.0   ;;  %v1094_v19 = vsub.f32 %v1092_v56, %v1093_v8  ;;  %v1101_v15 = vsub.f32 %v1099_v25, %v1100_v9 }
 0x6ad   :  { %3490 = vmatprep.subr.bf16.mxu1 %v4622_v12  ;;  %3598 = vmatprep.subr.bf16.mxu0 %v4622_v12  ;;  %v4623_v56 = vmov 0.0  }
 0x6ae   :  { %3492 = vmatpush3.bf16.msra.mxu1 %v4307_v29  ;;  %v1095_v39 = vand.u32 4294901760, %v1094_v19  ;;  %v1102_v46 = vand.u32 4294901760, %v1101_v15  ;;  %3600 = vmatpush3.bf16.msra.mxu0 %v4307_v29  ;;  %v4324_v19 = vpack.c.bf16 %v1113_v23, %v1106_v61  ;;  %v4326_v15 = vpack.c.bf16 %v1100_v9, %v1093_v8 }
 0x6af   :  { %3493 = vmatprep.subr.bf16.mxu1 %v4622_v12  ;;  %3601 = vmatprep.subr.bf16.mxu0 %v4622_v12 }
 0x6b6   :  { %v4289_v59 = vpop.permute.xlu1 %991 }
 0x6b7   :  { %4621 = vst [vmem:[#allocation19_spill] sm:$0xff] %v4289_v59 }
 0x6ba   :  { %v985_v42 = vpop.permute.xlu1 %984 }
 0x6bb   :  { %v987_v52 = vadd.f32 %v985_v42, %v977_v27  ;;  %v1114_v27 = vand.u32 4294901760, %v1113_v23  ;;  %v4318_v42 = vpack.c.bf16 %v1102_v46, %v1095_v39 }
 0x6bd   :  { %v994_v20 = vadd.f32 %v4289_v59, %v987_v52  ;;  %v1108_v52 = vsub.f32 %v1106_v61, %v1107_v24  ;;  %v1115_v59 = vsub.f32 %v1113_v23, %v1114_v27  ;;  %v4328_v57 = vpack.c.bf16 %v1114_v27, %v1107_v24 }
 0x6bf   :  { %996 = vrot.lane.b32.xlu0 %v994_v20, %s3815_s22  ;;  %v1109_v17 = vand.u32 4294901760, %v1108_v52  ;;  %v1116_v10 = vand.u32 4294901760, %v1115_v59 }
 0x6c1   :  { %v4320_v21 = vpack.c.bf16 %v1116_v10, %v1109_v17  ;;  %v2886_v10 = vld [vmem:[%s4567_s0 + $0x1] sm:$0x1] }
 0x731   :  { %v997_v14 = vpop.permute.xlu0 %996 }
 0x732   :  { %v999_v6 = vmax.f32 %v994_v20, %v997_v14 }
 0x734   :  { %v1006_v39 = vsel %vm1004_vm5, %v999_v6, 0 }
 0x735   :  { %v1080_v46 = vand.u32 4294901760, %v1006_v39 }
 0x737   :  { %v1081_v47 = vsub.f32 %v1006_v39, %v1080_v46 }
 0x739   :  { %v1082_v28 = vand.u32 4294901760, %v1081_v47 }
 0x73b   :  { %v1083_v52 = vsub.f32 %v1081_v47, %v1082_v28 }
 0x73d   :  { %v1084_v59 = vand.u32 4294901760, %v1083_v52 }
 0x73f   :  { %3178 = vmatmul.mubr.f32.vlgmr.msra.gmra.mrb[0].mxu1 %v1084_v59 }
 0x740   :  { %3495 = vmatpush3.bf16.msra.mxu1 %v4318_v42  ;;  %3188 = vmatprep.mubr.msk.f32.mxu1 %vm3820_vm2, %v4623_v56 }
 0x741   :  { %3496 = vmatprep.subr.bf16.mxu1 %v4622_v12 }
 0x744   :  { %3498 = vmatpush3.bf16.msra.mxu1 %v4320_v21 }
 0x745   :  { %3499 = vmatprep.subr.bf16.mxu1 %v4622_v12 }
 0x747   :  { %3189 = vmatmul.mubr.f32.vlgmr.msra.gmra.mrb[0].mxu1 %v1080_v46 }
 0x748   :  { %3501 = vmatpush3.bf16.msra.mxu1 %v4322_v18  ;;  %3199 = vmatprep.mubr.msk.f32.mxu1 %vm3820_vm2, %v4623_v56 }
 0x749   :  { %3502 = vmatprep.subr.bf16.mxu1 %v4622_v12 }
 0x74c   :  { %3504 = vmatpush3.bf16.msra.mxu1 %v4324_v19 }
 0x74d   :  { %3505 = vmatprep.subr.bf16.mxu1 %v4622_v12 }
 0x74f   :  { %3200 = vmatmul.mubr.f32.vlgmr.msra.gmra.mrb[0].mxu1 %v1081_v47 }
 0x750   :  { %3507 = vmatpush3.bf16.msra.mxu1 %v4304_v26  ;;  %3210 = vmatprep.mubr.msk.f32.mxu1 %vm3820_vm2, %v4623_v56 }
 0x751   :  { %3508 = vmatprep.subr.bf16.mxu1 %v4622_v12 }
 0x754   :  { %3510 = vmatpush3.bf16.msra.mxu1 %v4307_v29 }
 0x755   :  { %3511 = vmatprep.subr.bf16.mxu1 %v4622_v12 }
 0x757   :  { %3211 = vmatmul.mubr.f32.vlgmr.msra.gmra.mrb[0].mxu1 %v1082_v28 }
 0x758   :  { %3513 = vmatpush3.bf16.msra.mxu1 %v4326_v15  ;;  %3221 = vmatprep.mubr.msk.f32.mxu1 %vm3820_vm2, %v4623_v56 }
 0x759   :  { %3514 = vmatprep.subr.bf16.mxu1 %v4622_v12 }
 0x75c   :  { %3516 = vmatpush3.bf16.msra.mxu1 %v4328_v57 }
 0x75d   :  { %3517 = vmatprep.subr.bf16.mxu1 %v4622_v12 }
 0x75f   :  { %3222 = vmatmul.mubr.f32.vlgmr.msra.gmra.mrb[0].mxu1 %v1080_v46 }
 0x760   :  { %3519 = vmatpush3.bf16.msra.mxu1 %v4304_v26  ;;  %3232 = vmatprep.mubr.msk.f32.mxu1 %vm3820_vm2, %v4623_v56 }
 0x761   :  { %3520 = vmatprep.subr.bf16.mxu1 %v4622_v12 }
 0x764   :  { %3522 = vmatpush3.bf16.msra.mxu1 %v4307_v29 }
 0x765   :  { %3523 = vmatprep.subr.bf16.mxu1 %v4622_v12 }
 0x767   :  { %3233 = vmatmul.mubr.f32.vlgmr.msra.gmra.mrb[0].mxu1 %v1080_v46  ;;  %v1539_v46 = vsel %vm46_vm0, %v2886_v10, 0.0 }
 0x768   :  { %3525 = vmatpush3.bf16.msra.mxu1 %v3969_v50  ;;  %3251 = vmatprep.mubr.msk.f32.mxu1 %vm3820_vm2, %v4623_v56 }
 0x769   :  { %3526 = vmatprep.subr.bf16.mxu1 %v4622_v12 }
 0x76c   :  { %3528 = vmatpush3.bf16.msra.mxu1 %v3988_v60 }
 0x76d   :  { %3529 = vmatprep.subr.bf16.mxu1 %v4622_v12 }
 0x770   :  { %3531 = vmatpush3.bf16.msra.mxu1 %v3999_v4 }
 0x771   :  { %3532 = vmatprep.subr.bf16.mxu1 %v4622_v12 }
 0x774   :  { %3534 = vmatpush3.bf16.msra.mxu1 %v4010_v13 }
 0x775   :  { %3535 = vmatprep.subr.bf16.mxu1 %v4622_v12 }
 0x83a   :  { %v1492_v6 = vpop.f32.mrb[0].mxu1 }
 0x83b   :  { %v3234_v47 = vpop.f32.mrb[1].mxu1  ;;  %v1497_v28 = vsel %vm1496_vm6, %v1492_v6, 0.0 }
 0x83c   :  { %1498 = vadd.xlane.f32.xlu1 %v1497_v28 }
 0x8c9   :  { %v1499_v14 = vpop.xlane.xlu1 %1498 }
 0x8ca   :  { %v1500_v61 = vrot.slane %v1499_v14, 4 }
 0x8cc   :  { %v1501_v25 = vadd.f32 %v1500_v61, %v1499_v14 }
 0x8ce   :  { %v1502_v8 = vrot.slane %v1501_v25, 2 }
 0x8d0   :  { %v1503_v9 = vadd.f32 %v1502_v8, %v1501_v25 }
 0x8d2   :  { %v1504_v20 = vrot.slane %v1503_v9, 1 }
 0x8d4   :  { %v1505_v23 = vadd.f32 %v1504_v20, %v1503_v9 }
 0x8d6   :  { %3683 = vpush %v1505_v23 }
 0x907   :  { %s3684_s12 = spop %3683 }
 0x908   :  { %s1509_s8 = smul.f32 0.008928572, %s3684_s12 }
 0x90a   :  { %v1510_v24 = vstv %s1509_s8 }
 0x90b   :  { %v1511_v27 = vsub.f32 %v1492_v6, %v1510_v24 }
 0x90d   :  { %v1512_v17 = vmul.f32 %v1511_v27, %v1511_v27 }
 0x90f   :  { %v1513_v39 = vsel %vm1496_vm6, %v1512_v17, 0.0 }
 0x910   :  { %1514 = vadd.xlane.f32.xlu0 %v1513_v39 }
 0x914   :  { %1540 = vadd.xlane.f32.xlu0 %v1539_v46 }
 0x99d   :  { %v1515_v52 = vpop.xlane.xlu0 %1514 }
 0x99e   :  { %v1516_v59 = vrot.slane %v1515_v52, 4 }
 0x9a0   :  { %v1517_v47 = vadd.f32 %v1516_v59, %v1515_v52  ;;  %v4380_v59 = vld [vmem:[%s4577_s10] sm:$0xff] }
 0x9a1   :  { %v1541_v6 = vpop.xlane.xlu0 %1540 }
 0x9a2   :  { %v1518_v28 = vrot.slane %v1517_v47, 2  ;;  %v1542_v8 = vrot.slane %v1541_v6, 4 }
 0x9a4   :  { %v1519_v14 = vadd.f32 %v1518_v28, %v1517_v47  ;;  %v1543_v9 = vadd.f32 %v1542_v8, %v1541_v6  ;;  %v4385_v28 = vld [vmem:[%s4578_s11] sm:$0xff] }
 0x9a6   :  { %v1520_v61 = vrot.slane %v1519_v14, 1  ;;  %v1544_v20 = vrot.slane %v1543_v9, 2 }
 0x9a8   :  { %v1521_v25 = vadd.f32 %v1520_v61, %v1519_v14  ;;  %v1545_v24 = vadd.f32 %v1544_v20, %v1543_v9 }
 0x9aa   :  { %3685 = vpush %v1521_v25  ;;  %v1546_v17 = vrot.slane %v1545_v24, 1 }
 0x9ac   :  { %v1547_v46 = vadd.f32 %v1546_v17, %v1545_v24 }
 0x9db   :  { %s3686_s30 = spop %3685 }
 0x9dc   :  { %s1525_s3 = smul.f32 0.008928572, %s3686_s30  ;;  %s3841_s30 = smov [#allocation2]  }
 0x9de   :  { %s1526_s0 = sadd.f32 1e-05, %s1525_s3  ;;  %s2875_s3 = sshll.u32 %s3841_s30, 4  ;;  %s2876_s3 = int_to_ptr.vmem [resolvable:$true] %s2875_s3 }
 0x9df   :  { %p3791_p1 = scmp.lt.s32.totalorder %s2876_s3, %s2876_s3 }
 0x9e0   :  { %v1527_v23 = vstv %s1526_s0  ;;  %s3786_s0 = scalar_lea.vmem %s2876_s3, 256 }
 0x9e1   :  { %3776 = vrsqrt.f32 %v1527_v23  ;;  %p3787_p0 = scmp.ne.s32.totalorder %s2876_s3, %s3786_s0  ;;  %p3792_p2 = scmp.lt.s32.totalorder %s3786_s0, %s3786_s0 }
 0x9e3   :  { %p3793_p3 = por %p3792_p2, %p3791_p1 }
 0x9e5   :  { %p3794_p4 = pnand %p3793_p3, %p3787_p0 }
 0x9eb   :  { %v3777_v39 = vpop.eup %3776 }
 0x9ec   :  { %3687 = vpush %v3777_v39 }
 0x9ed   :  { %3689 = vpush %v1547_v46 }
 0xa1d   :  { %s3688_s14 = spop %3687 }
 0xa1e   :  { %v1530_v52 = vstv %s3688_s14  ;;  %s3690_s17 = spop %3689 }
 0xa1f   :  { %v1531_v47 = vmul.f32 %v1530_v52, %v1511_v27  ;;  %s1551_s18 = smul.f32 0.015625, %s3690_s17 }
 0xa21   :  { %v1533_v14 = vmul.f32 %v4380_v59, %v1531_v47  ;;  %v1552_v61 = vstv %s1551_s18 }
 0xa22   :  { %v1553_v25 = vsub.f32 %v2886_v10, %v1552_v61 }
 0xa23   :  { %v1535_v6 = vadd.f32 %v4385_v28, %v1533_v14 }
 0xa24   :  { %v1554_v8 = vmul.f32 %v1553_v25, %v1553_v25 }
 0xa25   :  { %v1536_v9 = vmax.f32 %v1535_v6, 0.0  ;;  %v3784_v6 = vld [vmem:[%s4568_s1] sm:$0x1] }
 0xa26   :  { %v1555_v20 = vsel %vm46_vm0, %v1554_v8, 0.0 }
 0xa27   :  { %2868 = vst.msk [vmem:[#allocation2] sm:$0xff] %vm1496_vm6, %v1536_v9  ;;  %1556 = vadd.xlane.f32.xlu1 %v1555_v20  ;;  %v3785_v9 = vld [vmem:[%s4569_s2] sm:$0x1] }
 0xab4   :  { %v1557_v27 = vpop.xlane.xlu1 %1556 }
 0xab5   :  { %v1558_v23 = vrot.slane %v1557_v27, 4 }
 0xab7   :  { %v1559_v24 = vadd.f32 %v1558_v23, %v1557_v27 }
 0xab9   :  { %v1560_v17 = vrot.slane %v1559_v24, 2 }
 0xabb   :  { %v1561_v39 = vadd.f32 %v1560_v17, %v1559_v24 }
 0xabd   :  { %v1562_v46 = vrot.slane %v1561_v39, 1 }
 0xabf   :  { %v1563_v52 = vadd.f32 %v1562_v46, %v1561_v39 }
 0xac1   :  { %3691 = vpush %v1563_v52 }
 0xaf2   :  { %s3692_s10 = spop %3691 }
 0xaf3   :  { %s1567_s11 = smul.f32 0.015625, %s3692_s10 }
 0xaf5   :  { %s1568_s9 = sadd.f32 1e-05, %s1567_s11 }
 0xaf7   :  { %v1569_v10 = vstv %s1568_s9 }
 0xaf8   :  { %3778 = vrsqrt.f32 %v1569_v10 }
 0xb02   :  { %v3779_v47 = vpop.eup %3778 }
 0xb03   :  { %3693 = vpush %v3779_v47 }
 0xb34   :  { %s3694_s4 = spop %3693 }
 0xb35   :  { %v1572_v14 = vstv %s3694_s4 }
 0xb36   :  { %v1573_v61 = vmul.f32 %v1572_v14, %v1553_v25 }
 0xb38   :  { %v1574_v8 = vmul.f32 %v3784_v6, %v1573_v61 }
 0xb3a   :  { %v1575_v20 = vadd.f32 %v3785_v9, %v1574_v8 }
 0xb3c   :  { %v1580_v27 = vrot.slane %v1575_v20, %v3937_v36 }
 0xb3e   :  { %v1590_v23 = vmul.f32 %v1580_v27, %v3944_v41  ;;  %v1584_v24 = vmul.f32 %v1580_v27, %v3939_v38  ;;  %v1596_v25 = vmul.f32 %v1580_v27, %v3947_v43  ;;  %v1602_v17 = vmul.f32 %v1580_v27, %v3973_v51 }
 0xb3f   :  { %v1582_v39 = vmul.f32 %v1580_v27, %v3978_v53 }
 0xb40   :  { %1592 = vrot.lane.b32.xlu1 %v1590_v23, %s3816_s27  ;;  %1586 = vrot.lane.b32.xlu0 %v1584_v24, %s3815_s22 }
 0xb44   :  { %1598 = vrot.lane.b32.xlu1 %v1596_v25, %s3818_s28  ;;  %1604 = vrot.lane.b32.xlu0 %v1602_v17, %s3819_s29 }
 0xbb2   :  { %v1593_v46 = vpop.permute.xlu1 %1592  ;;  %v1587_v52 = vpop.permute.xlu0 %1586 }
 0xbb3   :  { %v1589_v10 = vadd.f32 %v1587_v52, %v1582_v39 }
 0xbb5   :  { %v1595_v41 = vadd.f32 %v1593_v46, %v1589_v10 }
 0xbb6   :  { %v1599_v47 = vpop.permute.xlu1 %1598  ;;  %v1605_v14 = vpop.permute.xlu0 %1604 }
 0xbb7   :  { %v1601_v38 = vadd.f32 %v1599_v47, %v1595_v41 }
 0xbb9   :  { %v1607_v61 = vadd.f32 %v1605_v14, %v1601_v38 }
 0xbbb   :  { %v1608_v6 = vadd.f32 %v1607_v61, %v3980_v54 }
 0xbbd   :  { %1610 = vrot.lane.b32.xlu1 %v1608_v6, %s3815_s22 }
 0xc2f   :  { %v1611_v43 = vpop.permute.xlu1 %1610 }
 0xc30   :  { %v1613_v51 = vmax.f32 %v1608_v6, %v1611_v43 }
 0xc32   :  { %v1615_v8 = vsel %vm160_vm3, %v1613_v51, 0  ;;  %v4624_v51 = vsub.s32 1, %v3928_v30 }
 0xc33   :  { %v1690_v9 = vand.u32 4294901760, %v1615_v8 }
 0xc35   :  { %v1691_v20 = vsub.f32 %v1615_v8, %v1690_v9 }
 0xc37   :  { %v1692_v23 = vand.u32 4294901760, %v1691_v20 }
 0xc39   :  { %v1693_v53 = vsub.f32 %v1691_v20, %v1692_v23 }
 0xc3b   :  { %v1694_v27 = vand.u32 4294901760, %v1693_v53  ;;  %v4627_v53 = vsub.s32 4, %v3928_v30 }
 0xc3d   :  { %3252 = vmatmul.mubr.f32.vlgmr.msra.gmra.mrb[2].mxu1 %v1694_v27 }
 0xc3e   :  { %3537 = vmatpush3.bf16.msra.mxu1 %v4045_v44  ;;  %3270 = vmatprep.mubr.msk.f32.mxu1 %vm3820_vm2, %v4623_v56 }
 0xc3f   :  { %3538 = vmatprep.subr.bf16.mxu1 %v4622_v12 }
 0xc42   :  { %3540 = vmatpush3.bf16.msra.mxu1 %v4020_v34 }
 0xc43   :  { %3541 = vmatprep.subr.bf16.mxu1 %v4622_v12 }
 0xc46   :  { %3543 = vmatpush3.bf16.msra.mxu1 %v4022_v58 }
 0xc47   :  { %3544 = vmatprep.subr.bf16.mxu1 %v4622_v12 }
 0xc4a   :  { %3546 = vmatpush3.bf16.msra.mxu1 %v4024_v62 }
 0xc4b   :  { %3547 = vmatprep.subr.bf16.mxu1 %v4622_v12 }
 0xc4d   :  { %3271 = vmatmul.mubr.f32.vlgmr.msra.gmra.mrb[2].mxu1 %v1690_v9 }
 0xc4e   :  { %3549 = vmatpush3.bf16.msra.mxu1 %v4056_v45  ;;  %3289 = vmatprep.mubr.msk.f32.mxu1 %vm3820_vm2, %v4623_v56 }
 0xc4f   :  { %3550 = vmatprep.subr.bf16.mxu1 %v4622_v12 }
 0xc52   :  { %3552 = vmatpush3.bf16.msra.mxu1 %v4026_v63 }
 0xc53   :  { %3553 = vmatprep.subr.bf16.mxu1 %v4622_v12 }
 0xc56   :  { %3555 = vmatpush3.bf16.msra.mxu1 %v4028_v0 }
 0xc57   :  { %3556 = vmatprep.subr.bf16.mxu1 %v4622_v12 }
 0xc5a   :  { %3558 = vmatpush3.bf16.msra.mxu1 %v4030_v1 }
 0xc5b   :  { %3559 = vmatprep.subr.bf16.mxu1 %v4622_v12 }
 0xc5d   :  { %3290 = vmatmul.mubr.f32.vlgmr.msra.gmra.mrb[2].mxu1 %v1691_v20 }
 0xc5e   :  { %3561 = vmatpush3.bf16.msra.mxu1 %v3969_v50  ;;  %3308 = vmatprep.mubr.msk.f32.mxu1 %vm3820_vm2, %v4623_v56 }
 0xc5f   :  { %3562 = vmatprep.subr.bf16.mxu1 %v4622_v12 }
 0xc62   :  { %3564 = vmatpush3.bf16.msra.mxu1 %v3988_v60 }
 0xc63   :  { %3565 = vmatprep.subr.bf16.mxu1 %v4622_v12 }
 0xc66   :  { %3567 = vmatpush3.bf16.msra.mxu1 %v3999_v4 }
 0xc67   :  { %3568 = vmatprep.subr.bf16.mxu1 %v4622_v12 }
 0xc6a   :  { %3570 = vmatpush3.bf16.msra.mxu1 %v4010_v13 }
 0xc6b   :  { %3571 = vmatprep.subr.bf16.mxu1 %v4622_v12 }
 0xc6d   :  { %3309 = vmatmul.mubr.f32.vlgmr.msra.gmra.mrb[2].mxu1 %v1692_v23 }
 0xc6e   :  { %3573 = vmatpush3.bf16.msra.mxu1 %v4078_v48  ;;  %3327 = vmatprep.mubr.msk.f32.mxu1 %vm3820_vm2, %v4623_v56 }
 0xc6f   :  { %3574 = vmatprep.subr.bf16.mxu1 %v4622_v12 }
 0xc72   :  { %3576 = vmatpush3.bf16.msra.mxu1 %v4032_v2 }
 0xc73   :  { %3577 = vmatprep.subr.bf16.mxu1 %v4622_v12 }
 0xc76   :  { %3579 = vmatpush3.bf16.msra.mxu1 %v4034_v3 }
 0xc77   :  { %3580 = vmatprep.subr.bf16.mxu1 %v4622_v12 }
 0xc7a   :  { %3582 = vmatpush3.bf16.msra.mxu1 %v4036_v5 }
 0xc7b   :  { %3583 = vmatprep.subr.bf16.mxu1 %v4622_v12 }
 0xc7d   :  { %3328 = vmatmul.mubr.f32.vlgmr.msra.gmra.mrb[2].mxu1 %v1690_v9 }
 0xc7e   :  { %3585 = vmatpush3.bf16.msra.mxu1 %v3969_v50  ;;  %3346 = vmatprep.mubr.msk.f32.mxu1 %vm3820_vm2, %v4623_v56 }
 0xc7f   :  { %3586 = vmatprep.subr.bf16.mxu1 %v4622_v12 }
 0xc82   :  { %3588 = vmatpush3.bf16.msra.mxu1 %v3988_v60 }
 0xc83   :  { %3589 = vmatprep.subr.bf16.mxu1 %v4622_v12 }
 0xc86   :  { %3591 = vmatpush3.bf16.msra.mxu1 %v3999_v4 }
 0xc87   :  { %3592 = vmatprep.subr.bf16.mxu1 %v4622_v12 }
 0xc8a   :  { %3594 = vmatpush3.bf16.msra.mxu1 %v4010_v13 }
 0xc8d   :  { %3347 = vmatmul.mubr.f32.vlgmr.msra.gmra.mrb[2].mxu1 %v1690_v9 }
 0xd60   :  { %v2150_v54 = vpop.f32.mrb[2].mxu1 }
 0xd61   :  { %v3348_v34 = vpop.f32.mrb[3].mxu1  ;;  %v2154_v50 = vsel %vm705_vm4, %v2150_v54, 0.0 }
 0xd62   :  { %2155 = vadd.xlane.f32.xlu0 %v2154_v50  ;;  %v4629_v34 = vsub.s32 5, %v3928_v30 }
 0xdef   :  { %v2156_v58 = vpop.xlane.xlu0 %2155 }
 0xdf0   :  { %v2157_v62 = vrot.slane %v2156_v58, 4 }
 0xdf2   :  { %v2158_v63 = vadd.f32 %v2157_v62, %v2156_v58  ;;  %v4631_v58 = vld [vmem:[#allocation6_spill] sm:$0xff] }
 0xdf4   :  { %v2159_v0 = vrot.slane %v2158_v63, 2 }
 0xdf6   :  { %v2160_v1 = vadd.f32 %v2159_v0, %v2158_v63  ;;  %v4632_v63 = vsub.s32 6, %v3928_v30 }
 0xdf8   :  { %v2161_v60 = vrot.slane %v2160_v1, 1 }
 0xdfa   :  { %v2162_v2 = vadd.f32 %v2161_v60, %v2160_v1  ;;  %v4634_v60 = vld [vmem:[#allocation7_spill] sm:$0xff] }
 0xdfc   :  { %3695 = vpush %v2162_v2 }
 0xe2d   :  { %s3696_s1 = spop %3695 }
 0xe2e   :  { %s2166_s2 = smul.f32 0.004166667, %s3696_s1 }
 0xe30   :  { %v2167_v4 = vstv %s2166_s2 }
 0xe31   :  { %v2168_v3 = vsub.f32 %v2150_v54, %v2167_v4  ;;  %v4635_v4 = vsub.s32 7, %v3928_v30 }
 0xe33   :  { %v2169_v5 = vmul.f32 %v2168_v3, %v2168_v3 }
 0xe35   :  { %v2170_v13 = vsel %vm705_vm4, %v2169_v5, 0.0  ;;  %v4636_v5 = vld [vmem:[#allocation11_spill] sm:$0xff] }
 0xe36   :  { %2171 = vadd.xlane.f32.xlu1 %v2170_v13 }
 0xec3   :  { %v2172_v44 = vpop.xlane.xlu1 %2171 }
 0xec4   :  { %v2173_v45 = vrot.slane %v2172_v44, 4 }
 0xec6   :  { %v2174_v48 = vadd.f32 %v2173_v45, %v2172_v44  ;;  %v4637_v44 = vld [vmem:[#allocation10_spill] sm:$0xff] }
 0xec8   :  { %v2175_v24 = vrot.slane %v2174_v48, 2 }
 0xeca   :  { %v2176_v25 = vadd.f32 %v2175_v24, %v2174_v48  ;;  %v4638_v48 = vld [vmem:[#allocation12_spill] sm:$0xff] }
 0xecc   :  { %v2177_v17 = vrot.slane %v2176_v25, 1 }
 0xece   :  { %v2178_v39 = vadd.f32 %v2177_v17, %v2176_v25 }
 0xed0   :  { %3697 = vpush %v2178_v39 }
 0xf01   :  { %s3698_s28 = spop %3697 }
 0xf02   :  { %s2182_s29 = smul.f32 0.004166667, %s3698_s28 }
 0xf04   :  { %s2183_s7 = sadd.f32 1e-05, %s2182_s29 }
 0xf06   :  { %v2184_v46 = vstv %s2183_s7 }
 0xf07   :  { %3780 = vrsqrt.f32 %v2184_v46 }
 0xf11   :  { %v3781_v52 = vpop.eup %3780 }
 0xf12   :  { %3699 = vpush %v3781_v52 }
 0xf43   :  { %s3700_s24 = spop %3699 }
 0xf44   :  { %v2187_v10 = vstv %s3700_s24 }
 0xf45   :  { %v2188_v41 = vmul.f32 %v2187_v10, %v2168_v3 }
 0xf47   :  { %v2189_v47 = vmul.f32 %v2188_v41, %v4149_v40 }
 0xf49   :  { %v2190_v38 = vadd.f32 %v2189_v47, %v4154_v49  ;;  %v4625_v49 = vsub.s32 2, %v3928_v30 }
 0xf4b   :  { %v2191_v14 = vmax.f32 %v2190_v38, 0.0 }
 0xf4d   :  { %v2195_v61 = vrot.slane %v2191_v14, %v3937_v36  ;;  %v2213_v8 = vrot.slane %v2191_v14, %v4624_v51  ;;  %v2231_v20 = vrot.slane %v2191_v14, %v4625_v49  ;;  %v2267_v27 = vrot.slane %v2191_v14, %v4627_v53 }
 0xf4e   :  { %v2285_v50 = vrot.slane %v2191_v14, %v4629_v34  ;;  %v2303_v0 = vrot.slane %v2191_v14, %v4632_v63  ;;  %v2321_v3 = vrot.slane %v2191_v14, %v4635_v4 }
 0xf4f   :  { %v2204_v6 = vmul.f32 %v2195_v61, %v4166_v7  ;;  %v2198_v43 = vmul.f32 %v2195_v61, %v4134_v31  ;;  %v2222_v9 = vmul.f32 %v2213_v8, %v4138_v33  ;;  %v2216_v40 = vmul.f32 %v2213_v8, %v4136_v32 }
 0xf50   :  { %v2240_v36 = vmul.f32 %v2231_v20, %v4142_v37  ;;  %v2234_v31 = vmul.f32 %v2231_v20, %v4140_v35  ;;  %v4626_v7 = vsub.s32 3, %v3928_v30  ;;  %v2276_v35 = vmul.f32 %v2267_v27, %v4178_v11  ;;  %v4628_v37 = vld [vmem:[#allocation5_spill] sm:$0xff] }
 0xf51   :  { %2206 = vrot.lane.b32.xlu1 %v2204_v6, %s3816_s27  ;;  %2200 = vrot.lane.b32.xlu0 %v2198_v43, %s3815_s22  ;;  %v2270_v54 = vmul.f32 %v2267_v27, %v4628_v37  ;;  %v2288_v62 = vmul.f32 %v2285_v50, %v4631_v58  ;;  %v4633_v11 = vld [vmem:[#allocation9_spill] sm:$0xff]  ;;  %v2306_v2 = vmul.f32 %v2303_v0, %v4634_v60 }
 0xf52   :  { %v2249_v23 = vrot.slane %v2191_v14, %v4626_v7  ;;  %v2312_v1 = vmul.f32 %v2303_v0, %v4633_v11  ;;  %v2330_v13 = vmul.f32 %v2321_v3, %v4636_v5  ;;  %v2324_v45 = vmul.f32 %v2321_v3, %v4637_v44  ;;  %v4639_v14 = vld [vmem:[#allocation13_spill] sm:$0xff] }
 0xf53   :  { %v2196_v24 = vmul.f32 %v2195_v61, %v4638_v48  ;;  %v2214_v30 = vmul.f32 %v2213_v8, %v4262_v22  ;;  %v2232_v6 = vmul.f32 %v2231_v20, %v4639_v14  ;;  %v4641_v22 = vld [vmem:[#allocation15_spill] sm:$0xff]  ;;  %v4642_v20 = vld [vmem:[#allocation16_spill] sm:$0xff] }
 0xf54   :  { %v2258_v32 = vmul.f32 %v2249_v23, %v4157_v55  ;;  %v2252_v33 = vmul.f32 %v2249_v23, %v4144_v16  ;;  %v4630_v55 = vld [vmem:[#allocation8_spill] sm:$0xff]  ;;  %v2268_v8 = vmul.f32 %v2267_v27, %v4641_v22  ;;  %v4644_v27 = vld [vmem:[#allocation18_spill] sm:$0xff] }
 0xf55   :  { %2224 = vrot.lane.b32.xlu1 %v2222_v9, %s3816_s27  ;;  %2218 = vrot.lane.b32.xlu0 %v2216_v40, %s3815_s22  ;;  %v2294_v16 = vmul.f32 %v2285_v50, %v4630_v55 }
 0xf59   :  { %2242 = vrot.lane.b32.xlu1 %v2240_v36, %s3816_s27  ;;  %2236 = vrot.lane.b32.xlu0 %v2234_v31, %s3815_s22  ;;  %v4640_v36 = vld [vmem:[#allocation14_spill] sm:$0xff] }
 0xf5a   :  { %v2250_v61 = vmul.f32 %v2249_v23, %v4640_v36  ;;  %v4643_v23 = vld [vmem:[#allocation17_spill] sm:$0xff] }
 0xf5b   :  { %v2304_v60 = vmul.f32 %v2303_v0, %v4643_v23 }
 0xf5d   :  { %2260 = vrot.lane.b32.xlu1 %v2258_v32, %s3816_s27  ;;  %2254 = vrot.lane.b32.xlu0 %v2252_v33, %s3815_s22 }
 0xf61   :  { %2278 = vrot.lane.b32.xlu1 %v2276_v35, %s3816_s27  ;;  %2272 = vrot.lane.b32.xlu0 %v2270_v54, %s3815_s22 }
 0xf65   :  { %2296 = vrot.lane.b32.xlu1 %v2294_v16, %s3816_s27  ;;  %2290 = vrot.lane.b32.xlu0 %v2288_v62, %s3815_s22  ;;  %v2286_v16 = vmul.f32 %v2285_v50, %v4642_v20  ;;  %v4645_v50 = vld [vmem:[#allocation19_spill] sm:$0xff] }
 0xf69   :  { %2314 = vrot.lane.b32.xlu1 %v2312_v1, %s3816_s27  ;;  %2308 = vrot.lane.b32.xlu0 %v2306_v2, %s3815_s22 }
 0xf6d   :  { %2332 = vrot.lane.b32.xlu1 %v2330_v13, %s3816_s27  ;;  %2326 = vrot.lane.b32.xlu0 %v2324_v45, %s3815_s22  ;;  %v2322_v45 = vmul.f32 %v2321_v3, %v4644_v27 }
 0xfc3   :  { %v2201_v25 = vpop.permute.xlu0 %2200  ;;  %v2207_v39 = vpop.permute.xlu1 %2206 }
 0xfc4   :  { %v2203_v17 = vadd.f32 %v2201_v25, %v2196_v24 }
 0xfc6   :  { %v2209_v46 = vadd.f32 %v2207_v39, %v2203_v17 }
 0xfc7   :  { %v2219_v10 = vpop.permute.xlu0 %2218  ;;  %v2225_v47 = vpop.permute.xlu1 %2224 }
 0xfc8   :  { %v2215_v52 = vadd.f32 %v2214_v30, %v2209_v46 }
 0xfca   :  { %v2221_v41 = vadd.f32 %v2219_v10, %v2215_v52 }
 0xfcb   :  { %v2237_v51 = vpop.permute.xlu0 %2236  ;;  %v2243_v40 = vpop.permute.xlu1 %2242 }
 0xfcc   :  { %v2227_v38 = vadd.f32 %v2225_v47, %v2221_v41 }
 0xfce   :  { %v2233_v43 = vadd.f32 %v2232_v6, %v2227_v38 }
 0xfcf   :  { %v2255_v7 = vpop.permute.xlu0 %2254  ;;  %v2261_v33 = vpop.permute.xlu1 %2260 }
 0xfd0   :  { %v2239_v9 = vadd.f32 %v2237_v51, %v2233_v43 }
 0xfd2   :  { %v2245_v49 = vadd.f32 %v2243_v40, %v2239_v9 }
 0xfd3   :  { %v2273_v37 = vpop.permute.xlu0 %2272  ;;  %v2279_v34 = vpop.permute.xlu1 %2278 }
 0xfd4   :  { %v2251_v31 = vadd.f32 %v2250_v61, %v2245_v49 }
 0xfd6   :  { %v2257_v32 = vadd.f32 %v2255_v7, %v2251_v31 }
 0xfd7   :  { %v2291_v62 = vpop.permute.xlu0 %2290  ;;  %v2297_v11 = vpop.permute.xlu1 %2296 }
 0xfd8   :  { %v2263_v53 = vadd.f32 %v2261_v33, %v2257_v32 }
 0xfda   :  { %v2269_v35 = vadd.f32 %v2268_v8, %v2263_v53 }
 0xfdb   :  { %v2309_v4 = vpop.permute.xlu0 %2308  ;;  %v2315_v13 = vpop.permute.xlu1 %2314 }
 0xfdc   :  { %v2275_v54 = vadd.f32 %v2273_v37, %v2269_v35 }
 0xfde   :  { %v2281_v55 = vadd.f32 %v2279_v34, %v2275_v54 }
 0xfdf   :  { %v2327_v24 = vpop.permute.xlu0 %2326  ;;  %v2333_v17 = vpop.permute.xlu1 %2332 }
 0xfe0   :  { %v2287_v58 = vadd.f32 %v2286_v16, %v2281_v55 }
 0xfe2   :  { %v2293_v63 = vadd.f32 %v2291_v62, %v2287_v58 }
 0xfe4   :  { %v2299_v1 = vadd.f32 %v2297_v11, %v2293_v63 }
 0xfe6   :  { %v2305_v2 = vadd.f32 %v2304_v60, %v2299_v1 }
 0xfe8   :  { %v2311_v5 = vadd.f32 %v2309_v4, %v2305_v2 }
 0xfea   :  { %v2317_v44 = vadd.f32 %v2315_v13, %v2311_v5 }
 0xfec   :  { %v2323_v48 = vadd.f32 %v2322_v45, %v2317_v44 }
 0xfee   :  { %v2329_v25 = vadd.f32 %v2327_v24, %v2323_v48 }
 0xff0   :  { %v2335_v39 = vadd.f32 %v2333_v17, %v2329_v25 }
 0xff2   :  { %v2336_v46 = vadd.f32 %v2335_v39, %v4645_v50 }
 0xff4   :  { %2338 = vrot.lane.b32.xlu0 %v2336_v46, %s3815_s22 }
0x1066   :  { %v2339_v30 = vpop.permute.xlu0 %2338 }
0x1067   :  { %v2341_v52 = vmax.f32 %v2336_v46, %v2339_v30 }
0x1069   :  { %v2343_v0 = vsel %vm1004_vm5, %v2341_v52, 0 }
0x106a   :  { %v2414_v10 = vand.u32 4294901760, %v2343_v0 }
0x106c   :  { %v2415_v41 = vsub.f32 %v2343_v0, %v2414_v10 }
0x106e   :  { %v2416_v47 = vand.u32 4294901760, %v2415_v41 }
0x1070   :  { %v2417_v38 = vsub.f32 %v2415_v41, %v2416_v47 }
0x1072   :  { %v2418_v14 = vand.u32 4294901760, %v2417_v38 }
0x1074   :  { %3358 = vmatmul.mubr.f32.vlgmr.msra.gmra.mrb[2].mxu0 %v2418_v14 }
0x1075   :  { %3603 = vmatpush3.bf16.msra.mxu0 %v4318_v42  ;;  %3368 = vmatprep.mubr.msk.f32.mxu0 %vm3820_vm2, %v4623_v56 }
0x1076   :  { %3604 = vmatprep.subr.bf16.mxu0 %v4622_v12 }
0x1079   :  { %3606 = vmatpush3.bf16.msra.mxu0 %v4320_v21 }
0x107a   :  { %3607 = vmatprep.subr.bf16.mxu0 %v4622_v12 }
0x107c   :  { %3369 = vmatmul.mubr.f32.vlgmr.msra.gmra.mrb[2].mxu0 %v2414_v10 }
0x107d   :  { %3609 = vmatpush3.bf16.msra.mxu0 %v4322_v18  ;;  %3379 = vmatprep.mubr.msk.f32.mxu0 %vm3820_vm2, %v4623_v56 }
0x107e   :  { %3610 = vmatprep.subr.bf16.mxu0 %v4622_v12 }
0x1081   :  { %3612 = vmatpush3.bf16.msra.mxu0 %v4324_v19 }
0x1082   :  { %3613 = vmatprep.subr.bf16.mxu0 %v4622_v12 }
0x1084   :  { %3380 = vmatmul.mubr.f32.vlgmr.msra.gmra.mrb[2].mxu0 %v2415_v41 }
0x1085   :  { %3615 = vmatpush3.bf16.msra.mxu0 %v4304_v26  ;;  %3390 = vmatprep.mubr.msk.f32.mxu0 %vm3820_vm2, %v4623_v56 }
0x1086   :  { %3616 = vmatprep.subr.bf16.mxu0 %v4622_v12 }
0x1089   :  { %3618 = vmatpush3.bf16.msra.mxu0 %v4307_v29 }
0x108a   :  { %3619 = vmatprep.subr.bf16.mxu0 %v4622_v12 }
0x108c   :  { %3391 = vmatmul.mubr.f32.vlgmr.msra.gmra.mrb[2].mxu0 %v2416_v47 }
0x108d   :  { %3621 = vmatpush3.bf16.msra.mxu0 %v4326_v15  ;;  %3401 = vmatprep.mubr.msk.f32.mxu0 %vm3820_vm2, %v4623_v56 }
0x108e   :  { %3622 = vmatprep.subr.bf16.mxu0 %v4622_v12 }
0x1091   :  { %3624 = vmatpush3.bf16.msra.mxu0 %v4328_v57 }
0x1092   :  { %3625 = vmatprep.subr.bf16.mxu0 %v4622_v12 }
0x1094   :  { %3402 = vmatmul.mubr.f32.vlgmr.msra.gmra.mrb[2].mxu0 %v2414_v10 }
0x1095   :  { %3627 = vmatpush3.bf16.msra.mxu0 %v4304_v26  ;;  %3412 = vmatprep.mubr.msk.f32.mxu0 %vm3820_vm2, %v4623_v56 }
0x1096   :  { %3628 = vmatprep.subr.bf16.mxu0 %v4622_v12 }
0x1099   :  { %3630 = vmatpush3.bf16.msra.mxu0 %v4307_v29 }
0x109c   :  { %3413 = vmatmul.mubr.f32.vlgmr.msra.gmra.mrb[2].mxu0 %v2414_v10 }
0x116f   :  { %v2826_v42 = vpop.f32.mrb[2].mxu0 }
0x1170   :  { %v3414_v21 = vpop.f32.mrb[3].mxu0  ;;  %v2830_v18 = vsel %vm1496_vm6, %v2826_v42, 0.0 }
0x1171   :  { %2831 = vadd.xlane.f32.xlu1 %v2830_v18 }
0x11fe   :  { %v2832_v19 = vpop.xlane.xlu1 %2831 }
0x11ff   :  { %v2833_v57 = vrot.slane %v2832_v19, 4 }
0x1201   :  { %v2834_v15 = vadd.f32 %v2833_v57, %v2832_v19 }
0x1203   :  { %v2835_v3 = vrot.slane %v2834_v15, 2 }
0x1205   :  { %v2836_v6 = vadd.f32 %v2835_v3, %v2834_v15 }
0x1207   :  { %v2837_v43 = vrot.slane %v2836_v6, 1 }
0x1209   :  { %v2838_v26 = vadd.f32 %v2837_v43, %v2836_v6 }
0x120b   :  { %3701 = vpush %v2838_v26 }
0x123c   :  { %s3702_s22 = spop %3701 }
0x123d   :  { %s2842_s27 = smul.f32 0.008928572, %s3702_s22 }
0x123f   :  { %v2843_v56 = vstv %s2842_s27 }
0x1240   :  { %v2844_v12 = vsub.f32 %v2826_v42, %v2843_v56 }
0x1242   :  { %v2845_v51 = vmul.f32 %v2844_v12, %v2844_v12 }
0x1244   :  { %v2846_v29 = vsel %vm1496_vm6, %v2845_v51, 0.0 }
0x1245   :  { %2847 = vadd.xlane.f32.xlu0 %v2846_v29 }
0x12d2   :  { %v2848_v9 = vpop.xlane.xlu0 %2847 }
0x12d3   :  { %v2849_v40 = vrot.slane %v2848_v9, 4 }
0x12d5   :  { %v2850_v49 = vadd.f32 %v2849_v40, %v2848_v9 }
0x12d7   :  { %v2851_v36 = vrot.slane %v2850_v49, 2 }
0x12d9   :  { %v2852_v61 = vadd.f32 %v2851_v36, %v2850_v49 }
0x12db   :  { %v2853_v31 = vrot.slane %v2852_v61, 1 }
0x12dd   :  { %v2854_v7 = vadd.f32 %v2853_v31, %v2852_v61 }
0x12df   :  { %3703 = vpush %v2854_v7 }
0x1310   :  { %s3704_s12 = spop %3703 }
0x1311   :  { %s2858_s8 = smul.f32 0.008928572, %s3704_s12 }
0x1313   :  { %s2859_s25 = sadd.f32 1e-05, %s2858_s8 }
0x1315   :  { %v2860_v32 = vstv %s2859_s25 }
0x1316   :  { %3782 = vrsqrt.f32 %v2860_v32 }
0x1320   :  { %v3783_v33 = vpop.eup %3782 }
0x1321   :  { %3705 = vpush %v3783_v33 }
0x1352   :  { %s3706_s26 = spop %3705 }
0x1353   :  { %v2863_v53 = vstv %s3706_s26 }
0x1354   :  { %v2864_v22 = vmul.f32 %v2863_v53, %v2844_v12 }
0x1356   :  { %v2865_v8 = vmul.f32 %v2864_v22, %v4380_v59 }
0x1358   :  { %v2866_v35 = vadd.f32 %v2865_v8, %v4385_v28 }
0x135a   :  { %v2867_v37 = vmax.f32 %v2866_v35, 0.0 }
0x135c   :  { %2869 = vst.msk [vmem:[#allocation2 + $0x8] sm:$0xff] %vm1496_vm6, %v2867_v37 }
0x135d   :  { %3797 = shalt.err (!%p3794_p4)
}
0x135e   :  { %s3798_s16 = scalar_lea.hbm %s4580_s13, 256 }
0x135f   :  { %p3799_p5 = scmp.ne.s32.totalorder %s4580_s13, %s3798_s16  ;;  %p3802_p6 = scmp.lt.u32.totalorder %s3798_s16, %s4580_s13 }
0x1361   :  { %p3804_p7 = pnand %p3802_p6, %p3799_p5 }
0x1363   :  { %3807 = shalt.err (!%p3804_p7)
}
0x1364   :  { %s3842_s10 = smov 128   ;;  %s3843_s11 = smov 8  }
0x1365   :  { %2881 = dma.vmem_to_hbm [thread:$0]  %s2876_s3, 256, %s4580_s13, [#allocation3], %s3842_s10, %s3842_s10, %s3843_s11  }
0x1366   :  { %3808 = dma.done.wait [#allocation3], 256  }
0x1367   :  { %3809 = vsyncadd [#allocation3], 4294967040 }
0x1368   :  { %2885 = vsyncpa [#allocation3], 1 }

</bundles_post_ra>
